<compile_context>
chip_gen: v7x
topology: tpu7x:2x2x1
jax: 0.10.0
libtpu: 0.0.40
codegen_flags: <defaults>
</compile_context>

<pallas_src>
import math
import jax
import jax.numpy as jnp
from jax.experimental import pallas as pl
from jax.experimental.pallas import tpu as pltpu

# ----------------------------- configuration ------------------------------
B = 2
DIM = 16                  # channels
NUM_HEADS = 2
HEAD_DIM = DIM // NUM_HEADS
WINDOW_SIZE = 8
SHIFT_SIZE = 0            # no shifted windows -> check_size is a no-op here
NETWORK_DEPTH = 8
H = W = 16                # spatial, divisible by WINDOW_SIZE (no padding)
N = WINDOW_SIZE * WINDOW_SIZE                                  # 64 tokens / window
SCALE = HEAD_DIM ** (-0.5)
WINDOWS_PER_IMAGE = (H // WINDOW_SIZE) * (W // WINDOW_SIZE)    # 4
NUM_WINDOWS = B * WINDOWS_PER_IMAGE                            # 8
META_HIDDEN = 256


# ------------------------- pure-JAX glue helpers ---------------------------
def get_relative_positions(window_size):
    coords_h = jnp.arange(window_size)
    coords_w = jnp.arange(window_size)
    coords = jnp.stack(jnp.meshgrid(coords_h, coords_w, indexing="ij"))   # (2, ws, ws)
    coords_flatten = coords.reshape(2, -1)                                # (2, N)
    rel = coords_flatten[:, :, None] - coords_flatten[:, None, :]         # (2, N, N)
    rel = jnp.transpose(rel, (1, 2, 0)).astype(jnp.float32)               # (N, N, 2)
    return jnp.sign(rel) * jnp.log1p(jnp.abs(rel))


def window_partition(x, ws):
    b, h, w, c = x.shape
    x = x.reshape(b, h // ws, ws, w // ws, ws, c)
    return jnp.transpose(x, (0, 1, 3, 2, 4, 5)).reshape(-1, ws * ws, c)


def window_reverse(windows, ws, h, w):
    b = windows.shape[0] // (h * w // ws // ws)
    x = windows.reshape(b, h // ws, w // ws, ws, ws, -1)
    return jnp.transpose(x, (0, 1, 3, 2, 4, 5)).reshape(b, h, w, -1)


# --------------------- setup-time meta-MLP Pallas kernel --------------------
def _meta_kernel(rp_ref, w1_ref, b1_ref, w2_ref, b2_ref, o_ref):
    # Linear(2,256) -> ReLU -> Linear(256,num_heads). Runs ONCE at setup time.
    h = jnp.dot(rp_ref[...], w1_ref[...], preferred_element_type=jnp.float32) + b1_ref[...]
    h = jnp.maximum(h, 0.0)
    o_ref[...] = (
        jnp.dot(h, w2_ref[...], preferred_element_type=jnp.float32) + b2_ref[...]
    ).astype(o_ref.dtype)


def meta_mlp(rp_flat, w1, b1, w2, b2):
    # rp_flat: (N*N, 2); torch Linear weights -> transpose for right-matmul.
    M = rp_flat.shape[0]          # 4096
    hidden = w1.shape[0]          # 256
    TM = 512                      # row tile -> bounds the (TM, 256) f32 intermediate
    return pl.pallas_call(
        _meta_kernel,
        out_shape=jax.ShapeDtypeStruct((M, NUM_HEADS), jnp.float32),
        grid=(M // TM,),
        in_specs=[
            pl.BlockSpec((TM, 2), lambda i: (i, 0)),
            pl.BlockSpec((2, hidden), lambda i: (0, 0)),
            pl.BlockSpec((1, hidden), lambda i: (0, 0)),
            pl.BlockSpec((hidden, NUM_HEADS), lambda i: (0, 0)),
            pl.BlockSpec((1, NUM_HEADS), lambda i: (0, 0)),
        ],
        out_specs=pl.BlockSpec((TM, NUM_HEADS), lambda i: (i, 0)),
        compiler_params=pltpu.CompilerParams(dimension_semantics=("parallel",)),
    )(rp_flat, w1.T, b1.reshape(1, -1), w2.T, b2.reshape(1, -1))


# --------------------------- fused attention kernel -------------------------
def _fused_attn_kernel(bias_ref, x_ref, wbig_ref, bbig_ref, bout_ref, o_ref, big_ref):
    """One grid step = the whole batch.

      bias : (num_heads, N, N)   relative-position bias (precomputed constant)
      x    : (nW*N, C) = (512, 16)   all window tokens, row = w*N + n
      wbig : (C, 4*DIM)  fused [Wq | Wk | Wv@Wproj_h0 | Wv@Wproj_h1]
      bbig : (1, 4*DIM)  [bq | bk | 0 | 0]
      bout : (1, DIM)    bv@Wproj + bproj   (softmax rows sum to 1 -> exact fold)
      o    : (N, nW*DIM) = (64, 128)  lane-dense output slab
      big  : VMEM scratch (nW*N, 4*DIM) for the fused projection result
    """
    # --- single MXU matmul for the fused QKV/V' projection of ALL tokens ----
    big_ref[...] = (
        jnp.dot(x_ref[...], wbig_ref[...], preferred_element_type=jnp.float32)
        + bbig_ref[...]
    )

    # Hoist loop-invariant loads out of the unrolled window loop.
    biases = tuple(bias_ref[h] for h in range(NUM_HEADS))   # each (N, N)
    bout = bout_ref[...]                                     # (1, DIM)

    for w in range(NUM_WINDOWS):                             # 8 windows, unrolled
        blk = big_ref[w * N:(w + 1) * N, :]                  # (64, 64) row-tile-aligned
        y = bout                                             # broadcasts to (N, DIM)
        for h in range(NUM_HEADS):                           # 2 heads, unrolled
            q = blk[:, h * HEAD_DIM:(h + 1) * HEAD_DIM] * SCALE
            k = blk[:, DIM + h * HEAD_DIM:DIM + (h + 1) * HEAD_DIM]
            vp = blk[:, 2 * DIM + h * DIM:2 * DIM + (h + 1) * DIM]   # (64, DIM)

            s = jnp.einsum("nd,md->nm", q, k,
                           preferred_element_type=jnp.float32) + biases[h]
            s = s - jnp.max(s, axis=-1, keepdims=True)
            p = jnp.exp(s)
            # Exact reciprocal: the denominator is only (64,1); exact divide is
            # essentially free and keeps bit-close parity with the reference.
            p = p * pl.reciprocal(jnp.sum(p, axis=-1, keepdims=True))
            # Wproj is pre-folded into vp -> no head concat, no extra matmul.
            y = y + jnp.dot(p, vp, preferred_element_type=jnp.float32)

        # Stores into the lane-dense (64,128) output block; the HBM writeback
        # DMA of the block is a single dense slab.
        o_ref[:, w * DIM:(w + 1) * DIM] = y.astype(o_ref.dtype)


def fused_window_attention(x_flat, bias, wbig, bbig, bout):
    total_rows, c = x_flat.shape                 # (512, 16)
    return pl.pallas_call(
        _fused_attn_kernel,
        out_shape=jax.ShapeDtypeStruct((N, NUM_WINDOWS * DIM), jnp.float32),
        grid=(1,),                               # single step: whole batch at once
        in_specs=[
            pl.BlockSpec((NUM_HEADS, N, N), lambda i: (0, 0, 0)),
            pl.BlockSpec((total_rows, c), lambda i: (0, 0)),
            pl.BlockSpec((DIM, 4 * DIM), lambda i: (0, 0)),
            pl.BlockSpec((1, 4 * DIM), lambda i: (0, 0)),
            pl.BlockSpec((1, DIM), lambda i: (0, 0)),
        ],
        out_specs=pl.BlockSpec((N, NUM_WINDOWS * DIM), lambda i: (0, 0)),
        scratch_shapes=[pltpu.VMEM((total_rows, 4 * DIM), jnp.float32)],
        compiler_params=pltpu.CompilerParams(dimension_semantics=("arbitrary",)),
    )(bias, x_flat, wbig, bbig, bout)


# ------------------------- setup-time preprocessing -------------------------
def prepare_params(params):
    """Fuse conv weights (incl. Wproj folded into per-head V) and precompute
    the constant relative-position bias. Runs once, outside the forward."""
    Wq = params["Wqk"][:DIM].reshape(DIM, DIM).T             # (C, DIM)
    Wk = params["Wqk"][DIM:].reshape(DIM, DIM).T             # (C, DIM)
    Wv = params["Wv"].reshape(DIM, DIM).T                    # (C, DIM)
    Wp = params["Wproj"].reshape(DIM, DIM).T                 # (attn-ch, out-ch)

    # Per-head V' = Wv_h @ Wproj_h  (removes head concat + proj matmul in-kernel)
    Wvp = [Wv[:, h * HEAD_DIM:(h + 1) * HEAD_DIM] @ Wp[h * HEAD_DIM:(h + 1) * HEAD_DIM, :]
           for h in range(NUM_HEADS)]                         # each (C, DIM)
    wbig = jnp.concatenate([Wq, Wk] + Wvp, axis=1)            # (C, 4*DIM) = (16, 64)

    bq = params["bqk"][:DIM]
    bk = params["bqk"][DIM:]
    bbig = jnp.concatenate(
        [bq, bk, jnp.zeros((2 * DIM,), jnp.float32)]).reshape(1, 4 * DIM)
    # softmax rows sum to 1 -> V bias and proj bias fold into one output bias.
    bout = (params["bv"] @ Wp + params["bproj"]).reshape(1, DIM)

    rp = get_relative_positions(WINDOW_SIZE).reshape(N * N, 2)
    bias = meta_mlp(rp, params["meta_w1"], params["meta_b1"],
                    params["meta_w2"], params["meta_b2"])     # (N*N, heads)
    bias = jnp.transpose(bias.reshape(N, N, NUM_HEADS), (2, 0, 1))  # (heads, N, N)

    return {"bias": bias, "wbig": wbig, "bbig": bbig, "bout": bout}


# ------------------------------ full forward -------------------------------
def attention_forward(X, prep):
    Bn, C, Hh, Ww = X.shape
    # check_size: shift_size==0 and H,W % window_size == 0 -> identity pad.
    x_nhwc = jnp.transpose(X, (0, 2, 3, 1))                   # (B, H, W, C)
    xw = window_partition(x_nhwc, WINDOW_SIZE)                # (nW, N, C)
    x_flat = xw.reshape(NUM_WINDOWS * N, DIM)                 # (512, 16) one slab

    o_slab = fused_window_attention(x_flat, prep["bias"], prep["wbig"],
                                    prep["bbig"], prep["bout"])   # (64, 128)

    # o_slab[n, w*DIM + d] -> (nW, N, DIM) windows, then reverse (layout only).
    yw = jnp.transpose(o_slab.reshape(N, NUM_WINDOWS, DIM), (1, 0, 2))
    y_nhwc = window_reverse(yw, WINDOW_SIZE, Hh, Ww)          # (B, H, W, dim)
    out = y_nhwc[:, SHIFT_SIZE:SHIFT_SIZE + Hh, SHIFT_SIZE:SHIFT_SIZE + Ww, :]
    return jnp.transpose(out, (0, 3, 1, 2))                   # (B, dim, H, W)


# -------------------------- pure-JAX reference -----------------------------
def _conv1x1_ref(x, w, b):
    return jnp.einsum("bchw,oc->bohw", x, w.reshape(w.shape[0], w.shape[1])) \
        + b[None, :, None, None]


def reference_forward(X, params):
    V = _conv1x1_ref(X, params["Wv"], params["bv"])
    QK = _conv1x1_ref(X, params["Wqk"], params["bqk"])
    QKV = jnp.concatenate([QK, V], axis=1)
    x = jnp.transpose(QKV, (0, 2, 3, 1))
    qkv = window_partition(x, WINDOW_SIZE)
    B_, n, _ = qkv.shape
    qkv_r = qkv.reshape(B_, n, 3, NUM_HEADS, HEAD_DIM).transpose(2, 0, 3, 1, 4)
    q, k, v = qkv_r[0] * SCALE, qkv_r[1], qkv_r[2]
    attn = jnp.einsum("bhnd,bhmd->bhnm", q, k)
    rp = get_relative_positions(WINDOW_SIZE)
    hmid = jnp.maximum(rp @ params["meta_w1"].T + params["meta_b1"], 0.0)
    bias = hmid @ params["meta_w2"].T + params["meta_b2"]
    bias = jnp.transpose(bias, (2, 0, 1))
    attn = jax.nn.softmax(attn + bias[None], axis=-1)
    xo = jnp.einsum("bhnm,bhmd->bhnd", attn, v)
    xo = jnp.transpose(xo, (0, 2, 1, 3)).reshape(B_, n, DIM)
    shifted_out = window_reverse(xo, WINDOW_SIZE, H, W)
    attn_out = jnp.transpose(shifted_out, (0, 3, 1, 2))
    return _conv1x1_ref(attn_out, params["Wproj"], params["bproj"])


# --------------------------- deterministic params --------------------------
def init_params(key):
    ks = jax.random.split(key, 9)
    gain = (8 * NETWORK_DEPTH) ** (-0.25)
    std_v = gain * math.sqrt(2.0 / float(DIM + DIM))         # V / proj convs
    std_qk = math.sqrt(2.0 / float(DIM + 2 * DIM))           # QK conv (dim*2 out)

    def tn(k, shape, std):
        return jax.random.truncated_normal(k, -2.0, 2.0, shape, jnp.float32) * std

    # Conv biases are set non-zero here (the module's init zeroes them) so the
    # setup-time bias folding (bqk / bv@Wproj + bproj) is actually exercised;
    # forward semantics are identical for any parameter values.
    params = {
        "Wv": tn(ks[0], (DIM, DIM, 1, 1), std_v),
        "bv": 0.05 * jax.random.normal(ks[5], (DIM,), jnp.float32),
        "Wqk": tn(ks[1], (2 * DIM, DIM, 1, 1), std_qk),
        "bqk": 0.05 * jax.random.normal(ks[6], (2 * DIM,), jnp.float32),
        "Wproj": tn(ks[2], (DIM, DIM, 1, 1), std_v),
        "bproj": 0.05 * jax.random.normal(ks[7], (DIM,), jnp.float32),
        # meta MLP (torch nn.Linear default-ish uniform init, deterministic)
        "meta_w1": jax.random.uniform(ks[3], (META_HIDDEN, 2), jnp.float32,
                                      -1.0 / math.sqrt(2), 1.0 / math.sqrt(2)),
        "meta_b1": jax.random.uniform(ks[8], (META_HIDDEN,), jnp.float32,
                                      -1.0 / math.sqrt(2), 1.0 / math.sqrt(2)),
        "meta_w2": jax.random.uniform(ks[4], (NUM_HEADS, META_HIDDEN), jnp.float32,
                                      -1.0 / 16.0, 1.0 / 16.0),
        "meta_b2": jnp.zeros((NUM_HEADS,), jnp.float32),
    }
    return params


# ---------------------------------- main -----------------------------------
if __name__ == "__main__":
    root = jax.random.PRNGKey(0)
    k_x, k_p = jax.random.split(root)
    X = jax.random.normal(k_x, (B, DIM, H, W), dtype=jnp.float32)
    params = init_params(k_p)

    # Setup: fuse weights + compute the constant relative-position bias once.
    prep = jax.tree_util.tree_map(jax.block_until_ready, prepare_params(params))

    fwd = jax.jit(attention_forward)
    out = jax.block_until_ready(fwd(X, prep))
    assert out.shape == (B, DIM, H, W)

    ref = reference_forward(X, params)
    err = float(jnp.max(jnp.abs(out - ref)))
    # f32 MXU matmuls + exact softmax divide -> error should be ~1e-5 level.
    if err > 2e-3:
        raise AssertionError(f"Pallas output mismatch vs reference, max abs err = {err}")
    print("KERNEL_OK")
</pallas_src>

<mosaic_0001>
module attributes {stable_mosaic.version = 11 : i64} {
  func.func @_meta_kernel(%arg0: i32, %arg1: memref<512x2xf32, #tpu.memory_space<vmem>>, %arg2: memref<2x256xf32, #tpu.memory_space<vmem>>, %arg3: memref<1x256xf32, #tpu.memory_space<vmem>>, %arg4: memref<256x2xf32, #tpu.memory_space<vmem>>, %arg5: memref<1x2xf32, #tpu.memory_space<vmem>>, %arg6: memref<512x2xf32, #tpu.memory_space<vmem>>) attributes {dimension_semantics = [#tpu.dimension_semantics<parallel>], iteration_bounds = array<i64: 8>, scalar_prefetch = 0 : i64, scratch_operands = 0 : i64, tpu.core_type = #tpu.core_type<tc>, window_params = [{transform_indices = @transform_0, window_bounds = array<i64: 512, 2>}, {pipeline_mode = #tpu.pipeline_mode<synchronous>, transform_indices = @transform_1, window_bounds = array<i64: 2, 256>}, {pipeline_mode = #tpu.pipeline_mode<synchronous>, transform_indices = @transform_2, window_bounds = array<i64: 1, 256>}, {pipeline_mode = #tpu.pipeline_mode<synchronous>, transform_indices = @transform_3, window_bounds = array<i64: 256, 2>}, {pipeline_mode = #tpu.pipeline_mode<synchronous>, transform_indices = @transform_4, window_bounds = array<i64: 1, 2>}, {transform_indices = @transform_5, window_bounds = array<i64: 512, 2>}]} {
    %c0 = arith.constant 0 : index
    %c0_0 = arith.constant 0 : index
    %0 = vector.load %arg1[%c0, %c0_0] : memref<512x2xf32, #tpu.memory_space<vmem>>, vector<512x2xf32>
    %c0_1 = arith.constant 0 : index
    %c0_2 = arith.constant 0 : index
    %1 = vector.load %arg2[%c0_1, %c0_2] : memref<2x256xf32, #tpu.memory_space<vmem>>, vector<2x256xf32>
    %cst = arith.constant dense<0.000000e+00> : vector<512x256xf32>
    %2 = tpu.matmul %0, %1, %cst {dimension_numbers = #tpu.dot_dimension_numbers<[1], [0], [0], [1], [0, 0, 1, 1], [], []>} : vector<512x2xf32>, vector<2x256xf32>, vector<512x256xf32> -> vector<512x256xf32>
    %c0_3 = arith.constant 0 : index
    %c0_4 = arith.constant 0 : index
    %3 = vector.load %arg3[%c0_3, %c0_4] : memref<1x256xf32, #tpu.memory_space<vmem>>, vector<1x256xf32>
    %4 = vector.broadcast %3 : vector<1x256xf32> to vector<512x256xf32>
    %5 = arith.addf %2, %4 : vector<512x256xf32>
    %cst_5 = arith.constant 0.000000e+00 : f32
    %6 = vector.broadcast %cst_5 : f32 to vector<512x256xf32>
    %7 = arith.maximumf %5, %6 : vector<512x256xf32>
    %c0_6 = arith.constant 0 : index
    %c0_7 = arith.constant 0 : index
    %8 = vector.load %arg4[%c0_6, %c0_7] : memref<256x2xf32, #tpu.memory_space<vmem>>, vector<256x2xf32>
    %cst_8 = arith.constant dense<0.000000e+00> : vector<512x2xf32>
    %9 = tpu.matmul %7, %8, %cst_8 {dimension_numbers = #tpu.dot_dimension_numbers<[1], [0], [0], [1], [0, 0, 1, 1], [], []>} : vector<512x256xf32>, vector<256x2xf32>, vector<512x2xf32> -> vector<512x2xf32>
    %c0_9 = arith.constant 0 : index
    %c0_10 = arith.constant 0 : index
    %10 = vector.load %arg5[%c0_9, %c0_10] : memref<1x2xf32, #tpu.memory_space<vmem>>, vector<1x2xf32>
    %11 = vector.broadcast %10 : vector<1x2xf32> to vector<512x2xf32>
    %12 = arith.addf %9, %11 : vector<512x2xf32>
    %c0_11 = arith.constant 0 : index
    %c0_12 = arith.constant 0 : index
    %13 = vector.load %arg6[%c0_11, %c0_12] : memref<512x2xf32, #tpu.memory_space<vmem>>, vector<512x2xf32>
    tpu.vector_store %arg6[%c0_11, %c0_12], %12 {strides = array<i32>} : memref<512x2xf32, #tpu.memory_space<vmem>>, vector<512x2xf32>,
    return
  }
  func.func @transform_0(%arg0: i32) -> (i32, i32) {
    %c0_i32 = arith.constant 0 : i32
    %c0_i32_0 = arith.constant 0 : i32
    return %arg0, %c0_i32 : i32, i32
  }
  func.func @transform_1(%arg0: i32) -> (i32, i32) {
    %c0_i32 = arith.constant 0 : i32
    %c0_i32_0 = arith.constant 0 : i32
    %c0_i32_1 = arith.constant 0 : i32
    return %c0_i32, %c0_i32_0 : i32, i32
  }
  func.func @transform_2(%arg0: i32) -> (i32, i32) {
    %c0_i32 = arith.constant 0 : i32
    %c0_i32_0 = arith.constant 0 : i32
    %c0_i32_1 = arith.constant 0 : i32
    return %c0_i32, %c0_i32_0 : i32, i32
  }
  func.func @transform_3(%arg0: i32) -> (i32, i32) {
    %c0_i32 = arith.constant 0 : i32
    %c0_i32_0 = arith.constant 0 : i32
    %c0_i32_1 = arith.constant 0 : i32
    return %c0_i32, %c0_i32_0 : i32, i32
  }
  func.func @transform_4(%arg0: i32) -> (i32, i32) {
    %c0_i32 = arith.constant 0 : i32
    %c0_i32_0 = arith.constant 0 : i32
    %c0_i32_1 = arith.constant 0 : i32
    return %c0_i32, %c0_i32_0 : i32, i32
  }
  func.func @transform_5(%arg0: i32) -> (i32, i32) {
    %c0_i32 = arith.constant 0 : i32
    %c0_i32_0 = arith.constant 0 : i32
    return %arg0, %c0_i32 : i32, i32
  }
}

</mosaic_0001>

<bundles_post_ra>
// kernel: tpu_custom_call.1
= control target key start
LH: loop header
LB: loop body
LE: loop exit
PB: predicated region body
PF: predicated region fallthrough
CT: control target
= control target key end

     0   :  { %s1842_s18 = smov 0   ;;  %s2564_s0 = inlined_call_operand.vmem [shape: f32[4096,2], index: 0, kind: input, shape index: {}]   ;;  %s2565_s1 = inlined_call_operand.vmem [shape: f32[2,256], index: 1, kind: input, shape index: {}]   ;;  %s2566_s2 = inlined_call_operand.vmem [shape: f32[1,256], index: 2, kind: input, shape index: {}]   ;;  %s2567_s3 = inlined_call_operand.vmem [shape: f32[256,2], index: 3, kind: input, shape index: {}]   ;;  %s2568_s4 = inlined_call_operand.vmem [shape: f32[1,2], index: 4, kind: input, shape index: {}]   ;;  %s2569_s5 = inlined_call_operand.vmem [shape: f32[4096,2], index: 5, kind: output, shape index: {}]  }
   0x1 LB: > { %s1633_s19 = sadd.s32 4294967295, %s1808_s18   ;;  %p1637_p0 = scmp.ge.s32.totalorder %s1808_s18, 1  ;;  %s1808_s18 = sphi %s1842_s18, %s15_s18  }
   0x2   : > { %p188_p1 = scmp.lt.s32.totalorder %s1808_s18, 9 }
   0x4   : > { %p189_p2 = pnand %p1637_p0, %p188_p1 }
   0x5   : > { %v1642_v0 = vld.sshfl [vmem:[%s2565_s1] sm:$0x33 pattern:$0x76325410] (!%p189_p2)  ;;  %vm507_vm0 = vcmask (!%p189_p2), 1041408   ;;  %v1810_v2 = vmov (!%p189_p2), 0.0  }
   0x6   : > { %192 = sbr.rel (%p189_p2) target bundleno = 702 (0x2be), region = 40  ;;  %v313_v1 = vcombine.high (!%p189_p2), %v1642_v0, %v1642_v0  ;;  %576 = vmatprep.mubr.f32.mxu0 (!%p189_p2), %v1810_v2  ;;  %s1638_s22 = sshll.u32 (!%p189_p2), %s1633_s19, 6  ;;  %vm314_vm1 = vcmask (!%p189_p2), 15360   ;;  %v1089_v17 = vld [vmem:[%s2567_s3] sm:$0xff] (!%p189_p2)  ;;  %v1090_v18 = vld [vmem:[%s2567_s3 + $0x8] sm:$0xff] (!%p189_p2)  ;;  %v1811_v20 = vmov (!%p189_p2), 0.0|0.0  }
   0x7   : > { %p217_p3 = scmp.lt.s32.totalorder (!%p189_p2), %s1638_s22, 511  ;;  %1760 = vmatprep.subr.bf16.mxu1 (!%p189_p2), %v1811_v20  ;;  %v1713_v21 = vpack.c.bf16 (!%p189_p2), %v1090_v18, %v1089_v17  ;;  %v1091_v22 = vld [vmem:[%s2567_s3 + $0x10] sm:$0xff] (!%p189_p2)  ;;  %v1092_v23 = vld [vmem:[%s2567_s3 + $0x18] sm:$0xff] (!%p189_p2)  ;;  %v1093_v26 = vld [vmem:[%s2567_s3 + $0x20] sm:$0xff] (!%p189_p2) }
   0x8   : > { %1643 = vmatprep.subr.msk.mxu0 (!%p189_p2), %vm507_vm0, %v313_v1  ;;  %v1716_v25 = vpack.c.bf16 (!%p189_p2), %v1092_v23, %v1091_v22  ;;  %v1094_v27 = vld [vmem:[%s2567_s3 + $0x28] sm:$0xff] (!%p189_p2)  ;;  %v1095_v30 = vld [vmem:[%s2567_s3 + $0x30] sm:$0xff] (!%p189_p2)  ;;  %v1096_v31 = vld [vmem:[%s2567_s3 + $0x38] sm:$0xff] (!%p189_p2) }
   0x9   : > { %1644 = vmatpush1.msk.msra.mxu0 (!%p189_p2), %vm507_vm0, %v1642_v0  ;;  %1776 = vmatpush1.bf16.msra.mxu1 (!%p189_p2), %v1713_v21  ;;  %v1719_v29 = vpack.c.bf16 (!%p189_p2), %v1094_v27, %v1093_v26  ;;  %v1722_v33 = vpack.c.bf16 (!%p189_p2), %v1096_v31, %v1095_v30  ;;  %v1097_v34 = vld [vmem:[%s2567_s3 + $0x40] sm:$0xff] (!%p189_p2)  ;;  %v1098_v35 = vld [vmem:[%s2567_s3 + $0x48] sm:$0xff] (!%p189_p2)  ;;  %v1099_v38 = vld [vmem:[%s2567_s3 + $0x50] sm:$0xff] (!%p189_p2) }
   0xa   : > { %1712 = vmatprep.subr.bf16.mxu0 (!%p189_p2), %v1811_v20  ;;  %1761 = vmatprep.subr.bf16.mxu1 (!%p189_p2), %v1811_v20  ;;  %v1725_v37 = vpack.c.bf16 (!%p189_p2), %v1098_v35, %v1097_v34  ;;  %v1100_v39 = vld [vmem:[%s2567_s3 + $0x58] sm:$0xff] (!%p189_p2)  ;;  %v1101_v42 = vld [vmem:[%s2567_s3 + $0x60] sm:$0xff] (!%p189_p2)  ;;  %v1102_v43 = vld [vmem:[%s2567_s3 + $0x68] sm:$0xff] (!%p189_p2) }
   0xb   : > { %v1728_v41 = vpack.c.bf16 (!%p189_p2), %v1100_v39, %v1099_v38  ;;  %v1731_v45 = vpack.c.bf16 (!%p189_p2), %v1102_v43, %v1101_v42  ;;  %v1103_v46 = vld [vmem:[%s2567_s3 + $0x70] sm:$0xff] (!%p189_p2)  ;;  %v1104_v47 = vld [vmem:[%s2567_s3 + $0x78] sm:$0xff] (!%p189_p2)  ;;  %v1105_v50 = vld [vmem:[%s2567_s3 + $0x80] sm:$0xff] (!%p189_p2) }
   0xc   : > { %v1734_v49 = vpack.c.bf16 (!%p189_p2), %v1104_v47, %v1103_v46  ;;  %v1106_v51 = vld [vmem:[%s2567_s3 + $0x88] sm:$0xff] (!%p189_p2)  ;;  %v1107_v54 = vld [vmem:[%s2567_s3 + $0x90] sm:$0xff] (!%p189_p2)  ;;  %v1108_v55 = vld [vmem:[%s2567_s3 + $0x98] sm:$0xff] (!%p189_p2) }
   0xd   : > { %s2571_s22 = smov (!%p217_p3, %s1638_s22), 511  ;;  %1777 = vmatpush1.bf16.msra.mxu1 %v1716_v25  ;;  %v1737_v53 = vpack.c.bf16 %v1106_v51, %v1105_v50  ;;  %v1740_v57 = vpack.c.bf16 %v1108_v55, %v1107_v54  ;;  %v1109_v58 = vld [vmem:[%s2567_s3 + $0xa0] sm:$0xff]  ;;  %v1110_v59 = vld [vmem:[%s2567_s3 + $0xa8] sm:$0xff]  ;;  %v1111_v62 = vld [vmem:[%s2567_s3 + $0xb0] sm:$0xff]  ;;  %v295_v55 = vlaneseq }
   0xe   : > { %s1639_s23 = sshll.u32 %s2571_s22, 3  ;;  %1762 = vmatprep.subr.bf16.mxu1 %v1811_v20  ;;  %v1743_v61 = vpack.c.bf16 %v1110_v59, %v1109_v58  ;;  %v1112_v63 = vld [vmem:[%s2567_s3 + $0xb8] sm:$0xff] }
   0xf   : > { %s1862_s26 = scalar_lea.vmem %s2564_s0, %s1639_s23  ;;  %v1746_v1 = vpack.c.bf16 %v1112_v63, %v1111_v62  ;;  %v296_v59 = vshrl.u32 %v295_v55, 7  ;;  %s2363_s8 = scalar_lea.vmem %s2569_s5, %s1639_s23 }
  0x10   : > { %v228_v3 = vld [vmem:[%s1862_s26] sm:$0xff]  ;;  %v229_v4 = vld [vmem:[%s1862_s26 + $0x8] sm:$0xff]  ;;  %v230_v5 = vld [vmem:[%s1862_s26 + $0x10] sm:$0xff] }
  0x11   : > { %1645 = vmatmul.mubr.msk.f32.vlgmr.msra.gmra.mrb[0].mxu0 %vm314_vm1, %v228_v3  ;;  %v231_v6 = vld [vmem:[%s1862_s26 + $0x18] sm:$0xff]  ;;  %v232_v7 = vld [vmem:[%s1862_s26 + $0x20] sm:$0xff]  ;;  %v233_v8 = vld [vmem:[%s1862_s26 + $0x28] sm:$0xff]  ;;  %1778 = vmatpush1.bf16.msra.mxu1 %v1719_v29  ;;  %v297_v63 = vsub.s32 0, %v296_v59 }
  0x12   : > { %582 = vmatprep.mubr.f32.mxu0 %v1810_v2  ;;  %v234_v9 = vld [vmem:[%s1862_s26 + $0x30] sm:$0xff]  ;;  %v235_v10 = vld [vmem:[%s1862_s26 + $0x38] sm:$0xff]  ;;  %v236_v11 = vld [vmem:[%s1862_s26 + $0x40] sm:$0xff]  ;;  %1714 = vmatpush1.bf16.msra.mxu0 %v1713_v21 }
  0x13   : > { %v237_v12 = vld [vmem:[%s1862_s26 + $0x48] sm:$0xff]  ;;  %v238_v13 = vld [vmem:[%s1862_s26 + $0x50] sm:$0xff]  ;;  %v239_v14 = vld [vmem:[%s1862_s26 + $0x58] sm:$0xff]  ;;  %1715 = vmatprep.subr.bf16.mxu0 %v1811_v20  ;;  %1763 = vmatprep.subr.bf16.mxu1 %v1811_v20 }
  0x14   : > { %v240_v15 = vld [vmem:[%s1862_s26 + $0x60] sm:$0xff]  ;;  %v241_v16 = vld [vmem:[%s1862_s26 + $0x68] sm:$0xff]  ;;  %v242_v19 = vld [vmem:[%s1862_s26 + $0x70] sm:$0xff] }
  0x15   : > { %1646 = vmatmul.mubr.msk.f32.gmra.mrb[2].mxu0 %vm314_vm1, %v229_v4  ;;  %v243_v24 = vld [vmem:[%s1862_s26 + $0x78] sm:$0xff]  ;;  %v244_v28 = vld [vmem:[%s1862_s26 + $0x80] sm:$0xff]  ;;  %v245_v32 = vld [vmem:[%s1862_s26 + $0x88] sm:$0xff]  ;;  %1779 = vmatpush1.bf16.msra.mxu1 %v1722_v33 }
  0x16   : > { %588 = vmatprep.mubr.f32.mxu0 %v1810_v2  ;;  %1717 = vmatpush1.bf16.msra.mxu0 %v1716_v25  ;;  %v246_v36 = vld [vmem:[%s1862_s26 + $0x90] sm:$0xff]  ;;  %v247_v40 = vld [vmem:[%s1862_s26 + $0x98] sm:$0xff]  ;;  %v248_v44 = vld [vmem:[%s1862_s26 + $0xa0] sm:$0xff] }
  0x17   : > { %1718 = vmatprep.subr.bf16.mxu0 %v1811_v20  ;;  %1764 = vmatprep.subr.bf16.mxu1 %v1811_v20  ;;  %v249_v48 = vld [vmem:[%s1862_s26 + $0xa8] sm:$0xff]  ;;  %v250_v52 = vld [vmem:[%s1862_s26 + $0xb0] sm:$0xff]  ;;  %v251_v56 = vld [vmem:[%s1862_s26 + $0xb8] sm:$0xff] }
  0x18   : > { %v252_v60 = vld [vmem:[%s1862_s26 + $0xc0] sm:$0xff]  ;;  %v253_v0 = vld [vmem:[%s1862_s26 + $0xc8] sm:$0xff]  ;;  %v259_v21 = vld [vmem:[%s1862_s26 + $0xf8] sm:$0xff] }
  0x19   : > { %1647 = vmatmul.mubr.msk.f32.gmra.mrb[4].mxu0 %vm314_vm1, %v230_v5  ;;  %1780 = vmatpush1.bf16.msra.mxu1 %v1725_v37  ;;  %v1113_v3 = vld [vmem:[%s2567_s3 + $0xc0] sm:$0xff]  ;;  %v1114_v4 = vld [vmem:[%s2567_s3 + $0xc8] sm:$0xff]  ;;  %v254_v5 = vld [vmem:[%s1862_s26 + $0xd0] sm:$0xff] }
  0x1a   : > { %594 = vmatprep.mubr.f32.mxu0 %v1810_v2  ;;  %1720 = vmatpush1.bf16.msra.mxu0 %v1719_v29  ;;  %v257_v17 = vld [vmem:[%s1862_s26 + $0xe8] sm:$0xff]  ;;  %v262_v23 = vld [vmem:[%s1862_s26 + $0x110] sm:$0xff]  ;;  %v264_v25 = vld [vmem:[%s1862_s26 + $0x120] sm:$0xff] }
  0x1b   : > { %1721 = vmatprep.subr.bf16.mxu0 %v1811_v20  ;;  %1765 = vmatprep.subr.bf16.mxu1 %v1811_v20  ;;  %v261_v22 = vld [vmem:[%s1862_s26 + $0x108] sm:$0xff]  ;;  %v266_v27 = vld [vmem:[%s1862_s26 + $0x130] sm:$0xff]  ;;  %v268_v29 = vld [vmem:[%s1862_s26 + $0x140] sm:$0xff] }
  0x1c   : > { %v265_v26 = vld [vmem:[%s1862_s26 + $0x128] sm:$0xff]  ;;  %v270_v31 = vld [vmem:[%s1862_s26 + $0x150] sm:$0xff]  ;;  %v284_v51 = vld [vmem:[%s1862_s26 + $0x1c0] sm:$0xff] }
  0x1d   : > { %1648 = vmatmul.mubr.msk.f32.gmra.mrb[6].mxu0 %vm314_vm1, %v231_v6  ;;  %1781 = vmatpush1.bf16.msra.mxu1 %v1728_v41  ;;  %v1749_v6 = vpack.c.bf16 %v1114_v4, %v1113_v3  ;;  %v269_v30 = vld [vmem:[%s1862_s26 + $0x148] sm:$0xff]  ;;  %v274_v35 = vld [vmem:[%s1862_s26 + $0x170] sm:$0xff]  ;;  %v287_v62 = vld [vmem:[%s1862_s26 + $0x1d8] sm:$0xff] }
  0x1e   : > { %600 = vmatprep.mubr.f32.mxu0 %v1810_v2  ;;  %1723 = vmatpush1.bf16.msra.mxu0 %v1722_v33  ;;  %v272_v33 = vld [vmem:[%s1862_s26 + $0x160] sm:$0xff]  ;;  %v273_v34 = vld [vmem:[%s1862_s26 + $0x168] sm:$0xff]  ;;  %v278_v39 = vld [vmem:[%s1862_s26 + $0x190] sm:$0xff] }
  0x1f   : > { %1724 = vmatprep.subr.bf16.mxu0 %v1811_v20  ;;  %1766 = vmatprep.subr.bf16.mxu1 %v1811_v20  ;;  %v277_v38 = vld [vmem:[%s1862_s26 + $0x188] sm:$0xff]  ;;  %v286_v58 = vld [vmem:[%s1862_s26 + $0x1d0] sm:$0xff] }
  0x20   : > { %v281_v42 = vld [vmem:[%s1862_s26 + $0x1a8] sm:$0xff] }
  0x21   : > { %1649 = vmatmul.mubr.msk.f32.gmra.mrb[8].mxu0 %vm314_vm1, %v232_v7  ;;  %1782 = vmatpush1.bf16.msra.mxu1 %v1731_v45  ;;  %v1115_v7 = vld [vmem:[%s2567_s3 + $0xd0] sm:$0xff]  ;;  %v285_v54 = vld [vmem:[%s1862_s26 + $0x1c8] sm:$0xff] }
  0x22   : > { %606 = vmatprep.mubr.f32.mxu0 %v1810_v2  ;;  %1726 = vmatpush1.bf16.msra.mxu0 %v1725_v37  ;;  %v276_v37 = vld [vmem:[%s1862_s26 + $0x180] sm:$0xff] }
  0x23   : > { %1727 = vmatprep.subr.bf16.mxu0 %v1811_v20  ;;  %1767 = vmatprep.subr.bf16.mxu1 %v1811_v20 }
  0x25   : > { %1650 = vmatmul.mubr.msk.f32.gmra.mrb[10].mxu0 %vm314_vm1, %v233_v8  ;;  %1783 = vmatpush1.bf16.msra.mxu1 %v1734_v49  ;;  %v1116_v8 = vld [vmem:[%s2567_s3 + $0xd8] sm:$0xff] }
  0x26   : > { %612 = vmatprep.mubr.f32.mxu0 %v1810_v2  ;;  %1729 = vmatpush1.bf16.msra.mxu0 %v1728_v41  ;;  %v280_v41 = vld [vmem:[%s1862_s26 + $0x1a0] sm:$0xff] }
  0x27   : > { %1730 = vmatprep.subr.bf16.mxu0 %v1811_v20  ;;  %1768 = vmatprep.subr.bf16.mxu1 %v1811_v20 }
  0x29   : > { %1651 = vmatmul.mubr.msk.f32.gmra.mrb[12].mxu0 %vm314_vm1, %v234_v9  ;;  %1784 = vmatpush1.bf16.msra.mxu1 %v1737_v53  ;;  %v255_v9 = vld [vmem:[%s1862_s26 + $0xd8] sm:$0xff] }
  0x2a   : > { %618 = vmatprep.mubr.f32.mxu0 %v1810_v2  ;;  %1732 = vmatpush1.bf16.msra.mxu0 %v1731_v45  ;;  %v282_v45 = vld [vmem:[%s1862_s26 + $0x1b0] sm:$0xff] }
  0x2b   : > { %1733 = vmatprep.subr.bf16.mxu0 %v1811_v20  ;;  %1769 = vmatprep.subr.bf16.mxu1 %v1811_v20 }
  0x2d   : > { %1652 = vmatmul.mubr.msk.f32.gmra.mrb[14].mxu0 %vm314_vm1, %v235_v10  ;;  %1785 = vmatpush1.bf16.msra.mxu1 %v1740_v57  ;;  %v1752_v10 = vpack.c.bf16 %v1116_v8, %v1115_v7 }
  0x2e   : > { %624 = vmatprep.mubr.f32.mxu0 %v1810_v2  ;;  %1735 = vmatpush1.bf16.msra.mxu0 %v1734_v49 }
  0x2f   : > { %1736 = vmatprep.subr.bf16.mxu0 %v1811_v20  ;;  %1770 = vmatprep.subr.bf16.mxu1 %v1811_v20 }
  0x31   : > { %1653 = vmatmul.mubr.msk.f32.gmra.mrb[16].mxu0 %vm314_vm1, %v236_v11  ;;  %1786 = vmatpush1.bf16.msra.mxu1 %v1743_v61  ;;  %v1117_v11 = vld [vmem:[%s2567_s3 + $0xe0] sm:$0xff] }
  0x32   : > { %630 = vmatprep.mubr.f32.mxu0 %v1810_v2  ;;  %1738 = vmatpush1.bf16.msra.mxu0 %v1737_v53 }
  0x33   : > { %1739 = vmatprep.subr.bf16.mxu0 %v1811_v20  ;;  %1771 = vmatprep.subr.bf16.mxu1 %v1811_v20 }
  0x35   : > { %1654 = vmatmul.mubr.msk.f32.gmra.mrb[18].mxu0 %vm314_vm1, %v237_v12  ;;  %1787 = vmatpush1.bf16.msra.mxu1 %v1746_v1  ;;  %v1118_v12 = vld [vmem:[%s2567_s3 + $0xe8] sm:$0xff] }
  0x36   : > { %636 = vmatprep.mubr.f32.mxu0 %v1810_v2  ;;  %1741 = vmatpush1.bf16.msra.mxu0 %v1740_v57 }
  0x37   : > { %1742 = vmatprep.subr.bf16.mxu0 %v1811_v20  ;;  %1772 = vmatprep.subr.bf16.mxu1 %v1811_v20 }
  0x39   : > { %1655 = vmatmul.mubr.msk.f32.gmra.mrb[20].mxu0 %vm314_vm1, %v238_v13  ;;  %1788 = vmatpush1.bf16.msra.mxu1 %v1749_v6  ;;  %v256_v13 = vld [vmem:[%s1862_s26 + $0xe0] sm:$0xff] }
  0x3a   : > { %642 = vmatprep.mubr.f32.mxu0 %v1810_v2  ;;  %1744 = vmatpush1.bf16.msra.mxu0 %v1743_v61 }
  0x3b   : > { %1745 = vmatprep.subr.bf16.mxu0 %v1811_v20  ;;  %1773 = vmatprep.subr.bf16.mxu1 %v1811_v20 }
  0x3d   : > { %1656 = vmatmul.mubr.msk.f32.gmra.mrb[22].mxu0 %vm314_vm1, %v239_v14  ;;  %1789 = vmatpush1.bf16.msra.mxu1 %v1752_v10  ;;  %v1755_v14 = vpack.c.bf16 %v1118_v12, %v1117_v11  ;;  %v289_v11 = vld [vmem:[%s1862_s26 + $0x1e8] sm:$0xff] }
  0x3e   : > { %648 = vmatprep.mubr.f32.mxu0 %v1810_v2  ;;  %1747 = vmatpush1.bf16.msra.mxu0 %v1746_v1  ;;  %v301_v1 = vsub.s32 1, %v296_v59 }
  0x3f   : > { %1748 = vmatprep.subr.bf16.mxu0 %v1811_v20  ;;  %1774 = vmatprep.subr.bf16.mxu1 %v1811_v20 }
  0x41   : > { %1657 = vmatmul.mubr.msk.f32.gmra.mrb[24].mxu0 %vm314_vm1, %v240_v15  ;;  %1790 = vmatpush1.bf16.msra.mxu1 %v1755_v14  ;;  %v1119_v15 = vld [vmem:[%s2567_s3 + $0xf0] sm:$0xff] }
  0x42   : > { %654 = vmatprep.mubr.f32.mxu0 %v1810_v2  ;;  %1750 = vmatpush1.bf16.msra.mxu0 %v1749_v6 }
  0x43   : > { %1751 = vmatprep.subr.bf16.mxu0 %v1811_v20  ;;  %1775 = vmatprep.subr.bf16.mxu1 %v1811_v20 }
  0x45   : > { %1658 = vmatmul.mubr.msk.f32.gmra.mrb[26].mxu0 %vm314_vm1, %v241_v16  ;;  %v1120_v16 = vld [vmem:[%s2567_s3 + $0xf8] sm:$0xff] }
  0x46   : > { %660 = vmatprep.mubr.f32.mxu0 %v1810_v2  ;;  %1753 = vmatpush1.bf16.msra.mxu0 %v1752_v10  ;;  %v1758_v18 = vpack.c.bf16 %v1120_v16, %v1119_v15 }
  0x47   : > { %1754 = vmatprep.subr.bf16.mxu0 %v1811_v20 }
  0x48   : > { %1791 = vmatpush1.bf16.msra.mxu1 %v1758_v18 }
  0x49   : > { %1659 = vmatmul.mubr.msk.f32.gmra.mrb[28].mxu0 %vm314_vm1, %v242_v19  ;;  %v258_v19 = vld [vmem:[%s1862_s26 + $0xf0] sm:$0xff] }
  0x4a   : > { %666 = vmatprep.mubr.f32.mxu0 %v1810_v2  ;;  %1756 = vmatpush1.bf16.msra.mxu0 %v1755_v14 }
  0x4b   : > { %1757 = vmatprep.subr.bf16.mxu0 %v1811_v20  ;;  %v260_v20 = vld [vmem:[%s1862_s26 + $0x100] sm:$0xff] }
  0x4d   : > { %1660 = vmatmul.mubr.msk.f32.gmra.mrb[30].mxu0 %vm314_vm1, %v243_v24  ;;  %v263_v24 = vld [vmem:[%s1862_s26 + $0x118] sm:$0xff] }
  0x4e   : > { %672 = vmatprep.mubr.f32.mxu0 %v1810_v2  ;;  %1759 = vmatpush1.bf16.msra.mxu0 %v1758_v18 }
  0x51   : > { %1661 = vmatmul.mubr.msk.f32.gmra.mrb[32].mxu0 %vm314_vm1, %v244_v28  ;;  %v267_v28 = vld [vmem:[%s1862_s26 + $0x138] sm:$0xff] }
  0x52   : > { %678 = vmatprep.mubr.f32.mxu0 %v1810_v2 }
  0x55   : > { %1662 = vmatmul.mubr.msk.f32.gmra.mrb[34].mxu0 %vm314_vm1, %v245_v32  ;;  %v271_v32 = vld [vmem:[%s1862_s26 + $0x158] sm:$0xff] }
  0x56   : > { %684 = vmatprep.mubr.f32.mxu0 %v1810_v2 }
  0x59   : > { %1663 = vmatmul.mubr.msk.f32.gmra.mrb[36].mxu0 %vm314_vm1, %v246_v36  ;;  %v275_v36 = vld [vmem:[%s1862_s26 + $0x178] sm:$0xff] }
  0x5a   : > { %690 = vmatprep.mubr.f32.mxu0 %v1810_v2 }
  0x5d   : > { %1664 = vmatmul.mubr.msk.f32.gmra.mrb[38].mxu0 %vm314_vm1, %v247_v40  ;;  %v279_v40 = vld [vmem:[%s1862_s26 + $0x198] sm:$0xff] }
  0x5e   : > { %696 = vmatprep.mubr.f32.mxu0 %v1810_v2 }
  0x61   : > { %1665 = vmatmul.mubr.msk.f32.gmra.mrb[40].mxu0 %vm314_vm1, %v248_v44 }
  0x62   : > { %702 = vmatprep.mubr.f32.mxu0 %v1810_v2 }
  0x65   : > { %1666 = vmatmul.mubr.msk.f32.gmra.mrb[42].mxu0 %vm314_vm1, %v249_v48  ;;  %v283_v48 = vld [vmem:[%s1862_s26 + $0x1b8] sm:$0xff] }
  0x66   : > { %708 = vmatprep.mubr.f32.mxu0 %v1810_v2 }
  0x69   : > { %1667 = vmatmul.mubr.msk.f32.gmra.mrb[44].mxu0 %vm314_vm1, %v250_v52 }
  0x6a   : > { %714 = vmatprep.mubr.f32.mxu0 %v1810_v2 }
  0x6d   : > { %1668 = vmatmul.mubr.msk.f32.gmra.mrb[46].mxu0 %vm314_vm1, %v251_v56 }
  0x6e   : > { %720 = vmatprep.mubr.f32.mxu0 %v1810_v2 }
  0x71   : > { %1669 = vmatmul.mubr.msk.f32.gmra.mrb[48].mxu0 %vm314_vm1, %v252_v60 }
  0x72   : > { %726 = vmatprep.mubr.f32.mxu0 %v1810_v2 }
  0x75   : > { %1670 = vmatmul.mubr.msk.f32.gmra.mrb[50].mxu0 %vm314_vm1, %v253_v0  ;;  %v293_v0 = vld [vmem:[%s2566_s2] sm:$0x3] }
  0x76   : > { %732 = vmatprep.mubr.f32.mxu0 %v1810_v2  ;;  %v2202_v6 = vrot.slane %v293_v0, %v297_v63  ;;  %v2204_v7 = vrot.slane %v293_v0, %v301_v1 }
  0x79   : > { %1671 = vmatmul.mubr.msk.f32.gmra.mrb[52].mxu0 %vm314_vm1, %v254_v5  ;;  %v288_v5 = vld [vmem:[%s1862_s26 + $0x1e0] sm:$0xff] }
  0x7a   : > { %738 = vmatprep.mubr.f32.mxu0 %v1810_v2 }
  0x7d   : > { %1672 = vmatmul.mubr.msk.f32.gmra.mrb[54].mxu0 %vm314_vm1, %v255_v9 }
  0x7e   : > { %744 = vmatprep.mubr.f32.mxu0 %v1810_v2 }
  0x81   : > { %1673 = vmatmul.mubr.msk.f32.gmra.mrb[56].mxu0 %vm314_vm1, %v256_v13 }
  0x82   : > { %750 = vmatprep.mubr.f32.mxu0 %v1810_v2 }
  0x85   : > { %1674 = vmatmul.mubr.msk.f32.gmra.mrb[58].mxu0 %vm314_vm1, %v257_v17 }
  0x86   : > { %756 = vmatprep.mubr.f32.mxu0 %v1810_v2 }
  0x89   : > { %1675 = vmatmul.mubr.msk.f32.gmra.mrb[60].mxu0 %vm314_vm1, %v258_v19  ;;  %v290_v19 = vld [vmem:[%s1862_s26 + $0x1f0] sm:$0xff] }
  0x8a   : > { %762 = vmatprep.mubr.f32.mxu0 %v1810_v2 }
  0x8d   : > { %1676 = vmatmul.mubr.msk.f32.gmra.mrb[62].mxu0 %vm314_vm1, %v259_v21 }
  0x8e   : > { %768 = vmatprep.mubr.f32.mxu0 %v1810_v2 }
  0x91   : > { %1677 = vmatmul.mubr.msk.f32.gmra.mrb[64].mxu0 %vm314_vm1, %v260_v20 }
  0x92   : > { %774 = vmatprep.mubr.f32.mxu0 %v1810_v2 }
  0x95   : > { %1678 = vmatmul.mubr.msk.f32.gmra.mrb[66].mxu0 %vm314_vm1, %v261_v22 }
  0x96   : > { %780 = vmatprep.mubr.f32.mxu0 %v1810_v2 }
  0x99   : > { %1679 = vmatmul.mubr.msk.f32.gmra.mrb[68].mxu0 %vm314_vm1, %v262_v23 }
  0x9a   : > { %786 = vmatprep.mubr.f32.mxu0 %v1810_v2 }
  0x9d   : > { %1680 = vmatmul.mubr.msk.f32.gmra.mrb[70].mxu0 %vm314_vm1, %v263_v24 }
  0x9e   : > { %792 = vmatprep.mubr.f32.mxu0 %v1810_v2 }
  0xa1   : > { %1681 = vmatmul.mubr.msk.f32.gmra.mrb[72].mxu0 %vm314_vm1, %v264_v25 }
  0xa2   : > { %798 = vmatprep.mubr.f32.mxu0 %v1810_v2 }
  0xa5   : > { %1682 = vmatmul.mubr.msk.f32.gmra.mrb[74].mxu0 %vm314_vm1, %v265_v26 }
  0xa6   : > { %804 = vmatprep.mubr.f32.mxu0 %v1810_v2 }
  0xa9   : > { %1683 = vmatmul.mubr.msk.f32.gmra.mrb[76].mxu0 %vm314_vm1, %v266_v27  ;;  %v291_v27 = vld [vmem:[%s1862_s26 + $0x1f8] sm:$0xff] }
  0xaa   : > { %810 = vmatprep.mubr.f32.mxu0 %v1810_v2 }
  0xad   : > { %1684 = vmatmul.mubr.msk.f32.gmra.mrb[78].mxu0 %vm314_vm1, %v267_v28 }
  0xae   : > { %816 = vmatprep.mubr.f32.mxu0 %v1810_v2 }
  0xb1   : > { %1685 = vmatmul.mubr.msk.f32.gmra.mrb[80].mxu0 %vm314_vm1, %v268_v29 }
  0xb2   : > { %822 = vmatprep.mubr.f32.mxu0 %v1810_v2 }
  0xb5   : > { %1686 = vmatmul.mubr.msk.f32.gmra.mrb[82].mxu0 %vm314_vm1, %v269_v30 }
  0xb6   : > { %828 = vmatprep.mubr.f32.mxu0 %v1810_v2 }
  0xb9   : > { %1687 = vmatmul.mubr.msk.f32.gmra.mrb[84].mxu0 %vm314_vm1, %v270_v31 }
  0xba   : > { %834 = vmatprep.mubr.f32.mxu0 %v1810_v2 }
  0xbd   : > { %1688 = vmatmul.mubr.msk.f32.gmra.mrb[86].mxu0 %vm314_vm1, %v271_v32 }
  0xbe   : > { %840 = vmatprep.mubr.f32.mxu0 %v1810_v2 }
  0xc1   : > { %1689 = vmatmul.mubr.msk.f32.gmra.mrb[88].mxu0 %vm314_vm1, %v272_v33 }
  0xc2   : > { %846 = vmatprep.mubr.f32.mxu0 %v1810_v2 }
  0xc5   : > { %1690 = vmatmul.mubr.msk.f32.gmra.mrb[90].mxu0 %vm314_vm1, %v273_v34 }
  0xc6   : > { %852 = vmatprep.mubr.f32.mxu0 %v1810_v2 }
  0xc9   : > { %1691 = vmatmul.mubr.msk.f32.gmra.mrb[92].mxu0 %vm314_vm1, %v274_v35 }
  0xca   : > { %858 = vmatprep.mubr.f32.mxu0 %v1810_v2 }
  0xcd   : > { %1692 = vmatmul.mubr.msk.f32.gmra.mrb[94].mxu0 %vm314_vm1, %v275_v36 }
  0xce   : > { %864 = vmatprep.mubr.f32.mxu0 %v1810_v2 }
  0xd1   : > { %1693 = vmatmul.mubr.msk.f32.gmra.mrb[96].mxu0 %vm314_vm1, %v276_v37 }
  0xd2   : > { %870 = vmatprep.mubr.f32.mxu0 %v1810_v2 }
  0xd5   : > { %1694 = vmatmul.mubr.msk.f32.gmra.mrb[98].mxu0 %vm314_vm1, %v277_v38 }
  0xd6   : > { %876 = vmatprep.mubr.f32.mxu0 %v1810_v2 }
  0xd9   : > { %1695 = vmatmul.mubr.msk.f32.gmra.mrb[100].mxu0 %vm314_vm1, %v278_v39 }
  0xda   : > { %882 = vmatprep.mubr.f32.mxu0 %v1810_v2 }
  0xdd   : > { %1696 = vmatmul.mubr.msk.f32.gmra.mrb[102].mxu0 %vm314_vm1, %v279_v40 }
  0xde   : > { %888 = vmatprep.mubr.f32.mxu0 %v1810_v2 }
  0xe1   : > { %1697 = vmatmul.mubr.msk.f32.gmra.mrb[104].mxu0 %vm314_vm1, %v280_v41 }
  0xe2   : > { %894 = vmatprep.mubr.f32.mxu0 %v1810_v2 }
  0xe4   : > { %v2152_v43 = vpop.f32.mrb[0].mxu0 }
  0xe5   : > { %v580_v44 = vpop.f32.mrb[1].mxu0  ;;  %1698 = vmatmul.mubr.msk.f32.gmra.mrb[106].mxu0 %vm314_vm1, %v281_v42  ;;  %v579_v28 = vadd.f32 %v2152_v43, %v2202_v6 }
  0xe6   : > { %900 = vmatprep.mubr.f32.mxu0 %v1810_v2  ;;  %v581_v21 = vadd.f32 %v580_v44, %v2204_v7 }
  0xe8   : > { %v2157_v46 = vpop.f32.mrb[2].mxu0  ;;  %v962_v29 = vmax.f32 %v581_v21, 0.0 }
  0xe9   : > { %v2159_v47 = vpop.f32.mrb[3].mxu0  ;;  %1699 = vmatmul.mubr.msk.f32.gmra.mrb[108].mxu0 %vm314_vm1, %v282_v45  ;;  %v585_v37 = vadd.f32 %v2157_v46, %v2202_v6 }
  0xea   : > { %906 = vmatprep.mubr.f32.mxu0 %v1810_v2  ;;  %v587_v30 = vadd.f32 %v2159_v47, %v2204_v7 }
  0xeb   : > { %v963_v47 = vmax.f32 %v585_v37, 0.0 }
  0xec   : > { %v2164_v49 = vpop.f32.mrb[4].mxu0  ;;  %v964_v38 = vmax.f32 %v587_v30, 0.0 }
  0xed   : > { %v2166_v50 = vpop.f32.mrb[5].mxu0  ;;  %1700 = vmatmul.mubr.msk.f32.gmra.mrb[110].mxu0 %vm314_vm1, %v283_v48  ;;  %v591_v46 = vadd.f32 %v2164_v49, %v2202_v6 }
  0xee   : > { %912 = vmatprep.mubr.f32.mxu0 %v1810_v2  ;;  %v593_v39 = vadd.f32 %v2166_v50, %v2204_v7 }
  0xef   : > { %v965_v63 = vmax.f32 %v591_v46, 0.0 }
  0xf0   : > { %v2171_v52 = vpop.f32.mrb[6].mxu0  ;;  %v966_v48 = vmax.f32 %v593_v39, 0.0 }
  0xf1   : > { %v2173_v53 = vpop.f32.mrb[7].mxu0  ;;  %1701 = vmatmul.mubr.msk.f32.gmra.mrb[112].mxu0 %vm314_vm1, %v284_v51  ;;  %v597_v49 = vadd.f32 %v2171_v52, %v2202_v6 }
  0xf2   : > { %918 = vmatprep.mubr.f32.mxu0 %v1810_v2  ;;  %v599_v50 = vadd.f32 %v2173_v53, %v2204_v7 }
  0xf4   : > { %v2178_v56 = vpop.f32.mrb[8].mxu0  ;;  %v968_v0 = vmax.f32 %v599_v50, 0.0 }
  0xf5   : > { %v2180_v57 = vpop.f32.mrb[9].mxu0  ;;  %1702 = vmatmul.mubr.msk.f32.gmra.mrb[114].mxu0 %vm314_vm1, %v285_v54  ;;  %v603_v52 = vadd.f32 %v2178_v56, %v2202_v6 }
  0xf6   : > { %924 = vmatprep.mubr.f32.mxu0 %v1810_v2  ;;  %v605_v53 = vadd.f32 %v2180_v57, %v2204_v7 }
  0xf7   : > { %v969_v21 = vmax.f32 %v603_v52, 0.0 }
  0xf8   : > { %v2185_v60 = vpop.f32.mrb[10].mxu0 }
  0xf9   : > { %v2187_v61 = vpop.f32.mrb[11].mxu0  ;;  %1703 = vmatmul.mubr.msk.f32.gmra.mrb[116].mxu0 %vm314_vm1, %v286_v58  ;;  %v609_v56 = vadd.f32 %v2185_v60, %v2202_v6 }
  0xfa   : > { %930 = vmatprep.mubr.f32.mxu0 %v1810_v2  ;;  %v611_v57 = vadd.f32 %v2187_v61, %v2204_v7 }
  0xfc   : > { %v2195_v3 = vpop.f32.mrb[12].mxu0 }
  0xfd   : > { %v2197_v4 = vpop.f32.mrb[13].mxu0  ;;  %1704 = vmatmul.mubr.msk.f32.gmra.mrb[118].mxu0 %vm314_vm1, %v287_v62  ;;  %v615_v60 = vadd.f32 %v2195_v3, %v2202_v6 }
  0xfe   : > { %936 = vmatprep.mubr.f32.mxu0 %v1810_v2  ;;  %v617_v61 = vadd.f32 %v2197_v4, %v2204_v7 }
 0x100   : > { %v620_v8 = vpop.f32.mrb[14].mxu0 }
 0x101   : > { %v621_v9 = vadd.f32 %v620_v8, %v2202_v6  ;;  %v622_v10 = vpop.f32.mrb[15].mxu0  ;;  %1705 = vmatmul.mubr.msk.f32.gmra.mrb[120].mxu0 %vm314_vm1, %v288_v5 }
 0x102   : > { %942 = vmatprep.mubr.f32.mxu0 %v1810_v2  ;;  %v623_v12 = vadd.f32 %v622_v10, %v2204_v7 }
 0x103   : > { %v975_v15 = vmax.f32 %v621_v9, 0.0 }
 0x104   : > { %v626_v13 = vpop.f32.mrb[16].mxu0  ;;  %v976_v14 = vmax.f32 %v623_v12, 0.0  ;;  %v967_v12 = vmax.f32 %v597_v49, 0.0 }
 0x105   : > { %v627_v16 = vadd.f32 %v626_v13, %v2202_v6  ;;  %v628_v17 = vpop.f32.mrb[17].mxu0  ;;  %1706 = vmatmul.mubr.msk.f32.gmra.mrb[122].mxu0 %vm314_vm1, %v289_v11  ;;  %v970_v13 = vmax.f32 %v605_v53, 0.0 }
 0x106   : > { %v629_v18 = vadd.f32 %v628_v17, %v2204_v7  ;;  %1227 = vmatprep.mubr.f32.mxu1 %v976_v14  ;;  %948 = vmatprep.mubr.f32.mxu0 %v1810_v2 }
 0x107   : > { %1228 = vmatmul.mubr.f32.vlgmr.msra.gmra.mrb[0].mxu1 %v975_v15  ;;  %v977_v23 = vmax.f32 %v627_v16, 0.0 }
 0x108   : > { %v978_v20 = vmax.f32 %v629_v18, 0.0  ;;  %v632_v22 = vpop.f32.mrb[18].mxu0 }
 0x109   : > { %v633_v24 = vadd.f32 %v632_v22, %v2202_v6  ;;  %v634_v25 = vpop.f32.mrb[19].mxu0  ;;  %1707 = vmatmul.mubr.msk.f32.gmra.mrb[124].mxu0 %vm314_vm1, %v290_v19 }
 0x10a   : > { %v635_v26 = vadd.f32 %v634_v25, %v2204_v7  ;;  %1232 = vmatprep.mubr.f32.mxu1 %v978_v20  ;;  %954 = vmatprep.mubr.f32.mxu0 %v1810_v2  ;;  %v961_v2 = vmax.f32 %v579_v28, 0.0  ;;  %v972_v20 = vmax.f32 %v611_v57, 0.0  ;;  %v971_v28 = vmax.f32 %v609_v56, 0.0 }
 0x10b   : > { %1233 = vmatmul.mubr.f32.gmra.mrb[2].mxu1 %v977_v23  ;;  %v979_v33 = vmax.f32 %v633_v24, 0.0 }
 0x10c   : > { %v980_v31 = vmax.f32 %v635_v26, 0.0  ;;  %v638_v32 = vpop.f32.mrb[20].mxu0 }
 0x10d   : > { %v639_v34 = vadd.f32 %v638_v32, %v2202_v6  ;;  %v640_v35 = vpop.f32.mrb[21].mxu0  ;;  %1708 = vmatmul.mubr.msk.f32.gmra.mrb[126].mxu0 %vm314_vm1, %v291_v27 }
 0x10e   : > { %v641_v36 = vadd.f32 %v640_v35, %v2204_v7  ;;  %1192 = vmatprep.mubr.f32.mxu0 %v962_v29  ;;  %1237 = vmatprep.mubr.f32.mxu1 %v980_v31  ;;  %v974_v29 = vmax.f32 %v617_v61, 0.0  ;;  %v973_v35 = vmax.f32 %v615_v60, 0.0 }
 0x10f   : > { %1238 = vmatmul.mubr.f32.gmra.mrb[4].mxu1 %v979_v33  ;;  %v981_v42 = vmax.f32 %v639_v34, 0.0 }
 0x110   : > { %v982_v40 = vmax.f32 %v641_v36, 0.0  ;;  %v644_v41 = vpop.f32.mrb[22].mxu0 }
 0x111   : > { %v645_v43 = vadd.f32 %v644_v41, %v2202_v6  ;;  %v646_v44 = vpop.f32.mrb[23].mxu0  ;;  %1193 = vmatmul.mubr.f32.vlgmr.msra.gmra.mrb[128].mxu0 %v961_v2 }
 0x112   : > { %v647_v45 = vadd.f32 %v646_v44, %v2204_v7  ;;  %1197 = vmatprep.mubr.f32.mxu0 %v964_v38  ;;  %1242 = vmatprep.mubr.f32.mxu1 %v982_v40 }
 0x113   : > { %1243 = vmatmul.mubr.f32.gmra.mrb[6].mxu1 %v981_v42  ;;  %v983_v55 = vmax.f32 %v645_v43, 0.0 }
 0x114   : > { %v984_v51 = vmax.f32 %v647_v45, 0.0  ;;  %v650_v54 = vpop.f32.mrb[24].mxu0 }
 0x115   : > { %v651_v58 = vadd.f32 %v650_v54, %v2202_v6  ;;  %v652_v59 = vpop.f32.mrb[25].mxu0  ;;  %1198 = vmatmul.mubr.f32.gmra.mrb[130].mxu0 %v963_v47 }
 0x116   : > { %v653_v62 = vadd.f32 %v652_v59, %v2204_v7  ;;  %1202 = vmatprep.mubr.f32.mxu0 %v966_v48  ;;  %1247 = vmatprep.mubr.f32.mxu1 %v984_v51 }
 0x117   : > { %1248 = vmatmul.mubr.f32.gmra.mrb[8].mxu1 %v983_v55  ;;  %v985_v8 = vmax.f32 %v651_v58, 0.0 }
 0x118   : > { %v986_v1 = vmax.f32 %v653_v62, 0.0  ;;  %v656_v5 = vpop.f32.mrb[26].mxu0 }
 0x119   : > { %v657_v9 = vadd.f32 %v656_v5, %v2202_v6  ;;  %v658_v10 = vpop.f32.mrb[27].mxu0  ;;  %1203 = vmatmul.mubr.f32.gmra.mrb[132].mxu0 %v965_v63 }
 0x11a   : > { %v659_v11 = vadd.f32 %v658_v10, %v2204_v7  ;;  %1207 = vmatprep.mubr.f32.mxu0 %v968_v0  ;;  %1252 = vmatprep.mubr.f32.mxu1 %v986_v1 }
 0x11b   : > { %1253 = vmatmul.mubr.f32.gmra.mrb[10].mxu1 %v985_v8  ;;  %v987_v16 = vmax.f32 %v657_v9, 0.0 }
 0x11c   : > { %v988_v14 = vmax.f32 %v659_v11, 0.0  ;;  %v662_v15 = vpop.f32.mrb[28].mxu0 }
 0x11d   : > { %v663_v17 = vadd.f32 %v662_v15, %v2202_v6  ;;  %v664_v18 = vpop.f32.mrb[29].mxu0  ;;  %1208 = vmatmul.mubr.f32.gmra.mrb[134].mxu0 %v967_v12 }
 0x11e   : > { %v665_v19 = vadd.f32 %v664_v18, %v2204_v7  ;;  %1212 = vmatprep.mubr.f32.mxu0 %v970_v13  ;;  %1257 = vmatprep.mubr.f32.mxu1 %v988_v14 }
 0x11f   : > { %1258 = vmatmul.mubr.f32.gmra.mrb[12].mxu1 %v987_v16  ;;  %v989_v24 = vmax.f32 %v663_v17, 0.0 }
 0x120   : > { %v990_v22 = vmax.f32 %v665_v19, 0.0  ;;  %v668_v23 = vpop.f32.mrb[30].mxu0 }
 0x121   : > { %v669_v25 = vadd.f32 %v668_v23, %v2202_v6  ;;  %v670_v26 = vpop.f32.mrb[31].mxu0  ;;  %1213 = vmatmul.mubr.f32.gmra.mrb[136].mxu0 %v969_v21 }
 0x122   : > { %v671_v27 = vadd.f32 %v670_v26, %v2204_v7  ;;  %1217 = vmatprep.mubr.f32.mxu0 %v972_v20  ;;  %1262 = vmatprep.mubr.f32.mxu1 %v990_v22 }
 0x123   : > { %1263 = vmatmul.mubr.f32.gmra.mrb[14].mxu1 %v989_v24  ;;  %v991_v4 = vmax.f32 %v669_v25, 0.0 }
 0x124   : > { %v992_v30 = vmax.f32 %v671_v27, 0.0  ;;  %v674_v31 = vpop.f32.mrb[32].mxu0 }
 0x125   : > { %v675_v32 = vadd.f32 %v674_v31, %v2202_v6  ;;  %v676_v33 = vpop.f32.mrb[33].mxu0  ;;  %1218 = vmatmul.mubr.f32.gmra.mrb[138].mxu0 %v971_v28 }
 0x126   : > { %v677_v34 = vadd.f32 %v676_v33, %v2204_v7  ;;  %1222 = vmatprep.mubr.f32.mxu0 %v974_v29  ;;  %1267 = vmatprep.mubr.f32.mxu1 %v992_v30 }
 0x127   : > { %1268 = vmatmul.mubr.f32.gmra.mrb[16].mxu1 %v991_v4  ;;  %v993_v37 = vmax.f32 %v675_v32, 0.0 }
 0x128   : > { %v994_v36 = vmax.f32 %v677_v34, 0.0  ;;  %v680_v2 = vpop.f32.mrb[34].mxu0 }
 0x129   : > { %v681_v3 = vadd.f32 %v680_v2, %v2202_v6  ;;  %v682_v38 = vpop.f32.mrb[35].mxu0  ;;  %1223 = vmatmul.mubr.f32.gmra.mrb[140].mxu0 %v973_v35 }
 0x12a   : > { %v683_v39 = vadd.f32 %v682_v38, %v2204_v7  ;;  %1272 = vmatprep.mubr.f32.mxu1 %v994_v36 }
 0x12b   : > { %1273 = vmatmul.mubr.f32.gmra.mrb[18].mxu1 %v993_v37  ;;  %v995_v42 = vmax.f32 %v681_v3, 0.0 }
 0x12c   : > { %v996_v40 = vmax.f32 %v683_v39, 0.0  ;;  %v686_v41 = vpop.f32.mrb[36].mxu0 }
 0x12d   : > { %v687_v43 = vadd.f32 %v686_v41, %v2202_v6  ;;  %v688_v44 = vpop.f32.mrb[37].mxu0 }
 0x12e   : > { %v689_v45 = vadd.f32 %v688_v44, %v2204_v7  ;;  %1277 = vmatprep.mubr.f32.mxu1 %v996_v40 }
 0x12f   : > { %1278 = vmatmul.mubr.f32.gmra.mrb[20].mxu1 %v995_v42  ;;  %v997_v48 = vmax.f32 %v687_v43, 0.0 }
 0x130   : > { %v998_v47 = vmax.f32 %v689_v45, 0.0  ;;  %v692_v46 = vpop.f32.mrb[38].mxu0 }
 0x131   : > { %v693_v50 = vadd.f32 %v692_v46, %v2202_v6  ;;  %v694_v51 = vpop.f32.mrb[39].mxu0 }
 0x132   : > { %v695_v54 = vadd.f32 %v694_v51, %v2204_v7  ;;  %1282 = vmatprep.mubr.f32.mxu1 %v998_v47 }
 0x133   : > { %1283 = vmatmul.mubr.f32.gmra.mrb[22].mxu1 %v997_v48  ;;  %v999_v59 = vmax.f32 %v693_v50, 0.0 }
 0x134   : > { %v1000_v55 = vmax.f32 %v695_v54, 0.0  ;;  %v698_v58 = vpop.f32.mrb[40].mxu0 }
 0x135   : > { %v699_v62 = vadd.f32 %v698_v58, %v2202_v6  ;;  %v700_v63 = vpop.f32.mrb[41].mxu0 }
 0x136   : > { %v701_v49 = vadd.f32 %v700_v63, %v2204_v7  ;;  %1287 = vmatprep.mubr.f32.mxu1 %v1000_v55 }
 0x137   : > { %1288 = vmatmul.mubr.f32.gmra.mrb[24].mxu1 %v999_v59  ;;  %v1001_v1 = vmax.f32 %v699_v62, 0.0 }
 0x138   : > { %v1002_v0 = vmax.f32 %v701_v49, 0.0  ;;  %v704_v53 = vpop.f32.mrb[42].mxu0 }
 0x139   : > { %v705_v5 = vadd.f32 %v704_v53, %v2202_v6  ;;  %v706_v8 = vpop.f32.mrb[43].mxu0 }
 0x13a   : > { %v707_v9 = vadd.f32 %v706_v8, %v2204_v7  ;;  %1292 = vmatprep.mubr.f32.mxu1 %v1002_v0 }
 0x13b   : > { %1293 = vmatmul.mubr.f32.gmra.mrb[26].mxu1 %v1001_v1  ;;  %v1003_v12 = vmax.f32 %v705_v5, 0.0 }
 0x13c   : > { %v1004_v10 = vmax.f32 %v707_v9, 0.0  ;;  %v710_v11 = vpop.f32.mrb[44].mxu0 }
 0x13d   : > { %v711_v52 = vadd.f32 %v710_v11, %v2202_v6  ;;  %v712_v13 = vpop.f32.mrb[45].mxu0 }
 0x13e   : > { %v713_v57 = vadd.f32 %v712_v13, %v2204_v7  ;;  %1297 = vmatprep.mubr.f32.mxu1 %v1004_v10 }
 0x13f   : > { %1298 = vmatmul.mubr.f32.gmra.mrb[28].mxu1 %v1003_v12  ;;  %v1005_v16 = vmax.f32 %v711_v52, 0.0 }
 0x140   : > { %v1006_v14 = vmax.f32 %v713_v57, 0.0  ;;  %v716_v15 = vpop.f32.mrb[46].mxu0 }
 0x141   : > { %v717_v17 = vadd.f32 %v716_v15, %v2202_v6  ;;  %v718_v18 = vpop.f32.mrb[47].mxu0 }
 0x142   : > { %v719_v19 = vadd.f32 %v718_v18, %v2204_v7  ;;  %1302 = vmatprep.mubr.f32.mxu1 %v1006_v14 }
 0x143   : > { %1303 = vmatmul.mubr.f32.gmra.mrb[30].mxu1 %v1005_v16  ;;  %v1007_v20 = vmax.f32 %v717_v17, 0.0 }
 0x144   : > { %v1008_v21 = vmax.f32 %v719_v19, 0.0  ;;  %v722_v56 = vpop.f32.mrb[48].mxu0 }
 0x145   : > { %v723_v61 = vadd.f32 %v722_v56, %v2202_v6  ;;  %v724_v22 = vpop.f32.mrb[49].mxu0 }
 0x146   : > { %v725_v23 = vadd.f32 %v724_v22, %v2204_v7  ;;  %1307 = vmatprep.mubr.f32.mxu1 %v1008_v21 }
 0x147   : > { %1308 = vmatmul.mubr.f32.gmra.mrb[32].mxu1 %v1007_v20  ;;  %v1009_v26 = vmax.f32 %v723_v61, 0.0 }
 0x148   : > { %v1010_v24 = vmax.f32 %v725_v23, 0.0  ;;  %v728_v25 = vpop.f32.mrb[50].mxu0 }
 0x149   : > { %v729_v27 = vadd.f32 %v728_v25, %v2202_v6  ;;  %v730_v28 = vpop.f32.mrb[51].mxu0 }
 0x14a   : > { %v731_v60 = vadd.f32 %v730_v28, %v2204_v7  ;;  %1312 = vmatprep.mubr.f32.mxu1 %v1010_v24 }
 0x14b   : > { %1313 = vmatmul.mubr.f32.gmra.mrb[34].mxu1 %v1009_v26  ;;  %v1011_v31 = vmax.f32 %v729_v27, 0.0 }
 0x14c   : > { %v1012_v29 = vmax.f32 %v731_v60, 0.0  ;;  %v734_v30 = vpop.f32.mrb[52].mxu0 }
 0x14d   : > { %v735_v4 = vadd.f32 %v734_v30, %v2202_v6  ;;  %v736_v32 = vpop.f32.mrb[53].mxu0 }
 0x14e   : > { %v737_v33 = vadd.f32 %v736_v32, %v2204_v7  ;;  %1317 = vmatprep.mubr.f32.mxu1 %v1012_v29 }
 0x14f   : > { %1318 = vmatmul.mubr.f32.gmra.mrb[36].mxu1 %v1011_v31  ;;  %v1013_v36 = vmax.f32 %v735_v4, 0.0 }
 0x150   : > { %v1014_v34 = vmax.f32 %v737_v33, 0.0  ;;  %v740_v35 = vpop.f32.mrb[54].mxu0 }
 0x151   : > { %v741_v2 = vadd.f32 %v740_v35, %v2202_v6  ;;  %v742_v37 = vpop.f32.mrb[55].mxu0 }
 0x152   : > { %v743_v3 = vadd.f32 %v742_v37, %v2204_v7  ;;  %1322 = vmatprep.mubr.f32.mxu1 %v1014_v34 }
 0x153   : > { %1323 = vmatmul.mubr.f32.gmra.mrb[38].mxu1 %v1013_v36  ;;  %v1015_v40 = vmax.f32 %v741_v2, 0.0 }
 0x154   : > { %v1016_v38 = vmax.f32 %v743_v3, 0.0  ;;  %v746_v39 = vpop.f32.mrb[56].mxu0 }
 0x155   : > { %v747_v41 = vadd.f32 %v746_v39, %v2202_v6  ;;  %v748_v42 = vpop.f32.mrb[57].mxu0 }
 0x156   : > { %v749_v43 = vadd.f32 %v748_v42, %v2204_v7  ;;  %1327 = vmatprep.mubr.f32.mxu1 %v1016_v38 }
 0x157   : > { %1328 = vmatmul.mubr.f32.gmra.mrb[40].mxu1 %v1015_v40  ;;  %v1017_v47 = vmax.f32 %v747_v41, 0.0 }
 0x158   : > { %v1018_v44 = vmax.f32 %v749_v43, 0.0  ;;  %v752_v45 = vpop.f32.mrb[58].mxu0 }
 0x159   : > { %v753_v46 = vadd.f32 %v752_v45, %v2202_v6  ;;  %v754_v48 = vpop.f32.mrb[59].mxu0 }
 0x15a   : > { %v755_v50 = vadd.f32 %v754_v48, %v2204_v7  ;;  %1332 = vmatprep.mubr.f32.mxu1 %v1018_v44 }
 0x15b   : > { %1333 = vmatmul.mubr.f32.gmra.mrb[42].mxu1 %v1017_v47  ;;  %v1019_v55 = vmax.f32 %v753_v46, 0.0 }
 0x15c   : > { %v1020_v51 = vmax.f32 %v755_v50, 0.0  ;;  %v758_v54 = vpop.f32.mrb[60].mxu0 }
 0x15d   : > { %v759_v58 = vadd.f32 %v758_v54, %v2202_v6  ;;  %v760_v59 = vpop.f32.mrb[61].mxu0 }
 0x15e   : > { %v761_v62 = vadd.f32 %v760_v59, %v2204_v7  ;;  %1337 = vmatprep.mubr.f32.mxu1 %v1020_v51 }
 0x15f   : > { %1338 = vmatmul.mubr.f32.gmra.mrb[44].mxu1 %v1019_v55  ;;  %v1021_v0 = vmax.f32 %v759_v58, 0.0 }
 0x160   : > { %v1022_v63 = vmax.f32 %v761_v62, 0.0  ;;  %v764_v49 = vpop.f32.mrb[62].mxu0 }
 0x161   : > { %v765_v53 = vadd.f32 %v764_v49, %v2202_v6  ;;  %v766_v1 = vpop.f32.mrb[63].mxu0 }
 0x162   : > { %v767_v5 = vadd.f32 %v766_v1, %v2204_v7  ;;  %1342 = vmatprep.mubr.f32.mxu1 %v1022_v63 }
 0x163   : > { %1343 = vmatmul.mubr.f32.gmra.mrb[46].mxu1 %v1021_v0  ;;  %v1023_v10 = vmax.f32 %v765_v53, 0.0 }
 0x164   : > { %v1024_v8 = vmax.f32 %v767_v5, 0.0  ;;  %v770_v9 = vpop.f32.mrb[64].mxu0 }
 0x165   : > { %v771_v11 = vadd.f32 %v770_v9, %v2202_v6  ;;  %v772_v12 = vpop.f32.mrb[65].mxu0 }
 0x166   : > { %v773_v52 = vadd.f32 %v772_v12, %v2204_v7  ;;  %1347 = vmatprep.mubr.f32.mxu1 %v1024_v8 }
 0x167   : > { %1348 = vmatmul.mubr.f32.gmra.mrb[48].mxu1 %v1023_v10  ;;  %v1025_v14 = vmax.f32 %v771_v11, 0.0 }
 0x168   : > { %v1026_v13 = vmax.f32 %v773_v52, 0.0  ;;  %v776_v57 = vpop.f32.mrb[66].mxu0 }
 0x169   : > { %v777_v15 = vadd.f32 %v776_v57, %v2202_v6  ;;  %v778_v16 = vpop.f32.mrb[67].mxu0 }
 0x16a   : > { %v779_v17 = vadd.f32 %v778_v16, %v2204_v7  ;;  %1352 = vmatprep.mubr.f32.mxu1 %v1026_v13 }
 0x16b   : > { %1353 = vmatmul.mubr.f32.gmra.mrb[50].mxu1 %v1025_v14  ;;  %v1027_v21 = vmax.f32 %v777_v15, 0.0 }
 0x16c   : > { %v1028_v18 = vmax.f32 %v779_v17, 0.0  ;;  %v782_v19 = vpop.f32.mrb[68].mxu0 }
 0x16d   : > { %v783_v56 = vadd.f32 %v782_v19, %v2202_v6  ;;  %v784_v20 = vpop.f32.mrb[69].mxu0 }
 0x16e   : > { %v785_v61 = vadd.f32 %v784_v20, %v2204_v7  ;;  %1357 = vmatprep.mubr.f32.mxu1 %v1028_v18 }
 0x16f   : > { %1358 = vmatmul.mubr.f32.gmra.mrb[52].mxu1 %v1027_v21  ;;  %v1029_v24 = vmax.f32 %v783_v56, 0.0 }
 0x170   : > { %v1030_v22 = vmax.f32 %v785_v61, 0.0  ;;  %v788_v23 = vpop.f32.mrb[70].mxu0 }
 0x171   : > { %v789_v25 = vadd.f32 %v788_v23, %v2202_v6  ;;  %v790_v26 = vpop.f32.mrb[71].mxu0 }
 0x172   : > { %v791_v27 = vadd.f32 %v790_v26, %v2204_v7  ;;  %1362 = vmatprep.mubr.f32.mxu1 %v1030_v22 }
 0x173   : > { %1363 = vmatmul.mubr.f32.gmra.mrb[54].mxu1 %v1029_v24  ;;  %v1031_v29 = vmax.f32 %v789_v25, 0.0 }
 0x174   : > { %v1032_v28 = vmax.f32 %v791_v27, 0.0  ;;  %v794_v60 = vpop.f32.mrb[72].mxu0 }
 0x175   : > { %v795_v30 = vadd.f32 %v794_v60, %v2202_v6  ;;  %v796_v31 = vpop.f32.mrb[73].mxu0 }
 0x176   : > { %v797_v4 = vadd.f32 %v796_v31, %v2204_v7  ;;  %1367 = vmatprep.mubr.f32.mxu1 %v1032_v28 }
 0x177   : > { %1368 = vmatmul.mubr.f32.gmra.mrb[56].mxu1 %v1031_v29  ;;  %v1033_v34 = vmax.f32 %v795_v30, 0.0 }
 0x178   : > { %v1034_v32 = vmax.f32 %v797_v4, 0.0  ;;  %v800_v33 = vpop.f32.mrb[74].mxu0 }
 0x179   : > { %v801_v35 = vadd.f32 %v800_v33, %v2202_v6  ;;  %v802_v36 = vpop.f32.mrb[75].mxu0 }
 0x17a   : > { %v803_v2 = vadd.f32 %v802_v36, %v2204_v7  ;;  %1372 = vmatprep.mubr.f32.mxu1 %v1034_v32 }
 0x17b   : > { %1373 = vmatmul.mubr.f32.gmra.mrb[58].mxu1 %v1033_v34  ;;  %v1035_v38 = vmax.f32 %v801_v35, 0.0 }
 0x17c   : > { %v1036_v37 = vmax.f32 %v803_v2, 0.0  ;;  %v806_v3 = vpop.f32.mrb[76].mxu0 }
 0x17d   : > { %v807_v39 = vadd.f32 %v806_v3, %v2202_v6  ;;  %v808_v40 = vpop.f32.mrb[77].mxu0 }
 0x17e   : > { %v809_v41 = vadd.f32 %v808_v40, %v2204_v7  ;;  %1377 = vmatprep.mubr.f32.mxu1 %v1036_v37 }
 0x17f   : > { %1378 = vmatmul.mubr.f32.gmra.mrb[60].mxu1 %v1035_v38  ;;  %v1037_v44 = vmax.f32 %v807_v39, 0.0 }
 0x180   : > { %v1038_v42 = vmax.f32 %v809_v41, 0.0  ;;  %v812_v43 = vpop.f32.mrb[78].mxu0 }
 0x181   : > { %v813_v45 = vadd.f32 %v812_v43, %v2202_v6  ;;  %v814_v47 = vpop.f32.mrb[79].mxu0 }
 0x182   : > { %v815_v46 = vadd.f32 %v814_v47, %v2204_v7  ;;  %1382 = vmatprep.mubr.f32.mxu1 %v1038_v42 }
 0x183   : > { %1383 = vmatmul.mubr.f32.gmra.mrb[62].mxu1 %v1037_v44  ;;  %v1039_v51 = vmax.f32 %v813_v45, 0.0 }
 0x184   : > { %v1040_v48 = vmax.f32 %v815_v46, 0.0  ;;  %v818_v50 = vpop.f32.mrb[80].mxu0 }
 0x185   : > { %v819_v54 = vadd.f32 %v818_v50, %v2202_v6  ;;  %v820_v55 = vpop.f32.mrb[81].mxu0 }
 0x186   : > { %v821_v58 = vadd.f32 %v820_v55, %v2204_v7  ;;  %1387 = vmatprep.mubr.f32.mxu1 %v1040_v48 }
 0x187   : > { %1388 = vmatmul.mubr.f32.gmra.mrb[64].mxu1 %v1039_v51  ;;  %v1041_v63 = vmax.f32 %v819_v54, 0.0 }
 0x188   : > { %v1042_v59 = vmax.f32 %v821_v58, 0.0  ;;  %v824_v62 = vpop.f32.mrb[82].mxu0 }
 0x189   : > { %v825_v49 = vadd.f32 %v824_v62, %v2202_v6  ;;  %v826_v0 = vpop.f32.mrb[83].mxu0 }
 0x18a   : > { %v827_v53 = vadd.f32 %v826_v0, %v2204_v7  ;;  %1392 = vmatprep.mubr.f32.mxu1 %v1042_v59 }
 0x18b   : > { %1393 = vmatmul.mubr.f32.gmra.mrb[66].mxu1 %v1041_v63  ;;  %v1043_v8 = vmax.f32 %v825_v49, 0.0 }
 0x18c   : > { %v1044_v1 = vmax.f32 %v827_v53, 0.0  ;;  %v830_v5 = vpop.f32.mrb[84].mxu0 }
 0x18d   : > { %v831_v9 = vadd.f32 %v830_v5, %v2202_v6  ;;  %v832_v10 = vpop.f32.mrb[85].mxu0 }
 0x18e   : > { %v833_v11 = vadd.f32 %v832_v10, %v2204_v7  ;;  %1397 = vmatprep.mubr.f32.mxu1 %v1044_v1 }
 0x18f   : > { %1398 = vmatmul.mubr.f32.gmra.mrb[68].mxu1 %v1043_v8  ;;  %v1045_v13 = vmax.f32 %v831_v9, 0.0 }
 0x190   : > { %v1046_v12 = vmax.f32 %v833_v11, 0.0  ;;  %v836_v52 = vpop.f32.mrb[86].mxu0 }
 0x191   : > { %v837_v57 = vadd.f32 %v836_v52, %v2202_v6  ;;  %v838_v14 = vpop.f32.mrb[87].mxu0 }
 0x192   : > { %v839_v15 = vadd.f32 %v838_v14, %v2204_v7  ;;  %1402 = vmatprep.mubr.f32.mxu1 %v1046_v12 }
 0x193   : > { %1403 = vmatmul.mubr.f32.gmra.mrb[70].mxu1 %v1045_v13  ;;  %v1047_v18 = vmax.f32 %v837_v57, 0.0 }
 0x194   : > { %v1048_v16 = vmax.f32 %v839_v15, 0.0  ;;  %v842_v17 = vpop.f32.mrb[88].mxu0 }
 0x195   : > { %v843_v19 = vadd.f32 %v842_v17, %v2202_v6  ;;  %v844_v21 = vpop.f32.mrb[89].mxu0 }
 0x196   : > { %v845_v56 = vadd.f32 %v844_v21, %v2204_v7  ;;  %1407 = vmatprep.mubr.f32.mxu1 %v1048_v16 }
 0x197   : > { %1408 = vmatmul.mubr.f32.gmra.mrb[72].mxu1 %v1047_v18  ;;  %v1049_v22 = vmax.f32 %v843_v19, 0.0 }
 0x198   : > { %v1050_v20 = vmax.f32 %v845_v56, 0.0  ;;  %v848_v61 = vpop.f32.mrb[90].mxu0 }
 0x199   : > { %v849_v23 = vadd.f32 %v848_v61, %v2202_v6  ;;  %v850_v24 = vpop.f32.mrb[91].mxu0 }
 0x19a   : > { %v851_v25 = vadd.f32 %v850_v24, %v2204_v7  ;;  %1412 = vmatprep.mubr.f32.mxu1 %v1050_v20 }
 0x19b   : > { %1413 = vmatmul.mubr.f32.gmra.mrb[74].mxu1 %v1049_v22  ;;  %v1051_v28 = vmax.f32 %v849_v23, 0.0 }
 0x19c   : > { %v1052_v26 = vmax.f32 %v851_v25, 0.0  ;;  %v854_v27 = vpop.f32.mrb[92].mxu0 }
 0x19d   : > { %v855_v60 = vadd.f32 %v854_v27, %v2202_v6  ;;  %v856_v29 = vpop.f32.mrb[93].mxu0 }
 0x19e   : > { %v857_v30 = vadd.f32 %v856_v29, %v2204_v7  ;;  %1417 = vmatprep.mubr.f32.mxu1 %v1052_v26 }
 0x19f   : > { %1418 = vmatmul.mubr.f32.gmra.mrb[76].mxu1 %v1051_v28  ;;  %v1053_v32 = vmax.f32 %v855_v60, 0.0 }
 0x1a0   : > { %v1054_v31 = vmax.f32 %v857_v30, 0.0  ;;  %v860_v4 = vpop.f32.mrb[94].mxu0 }
 0x1a1   : > { %v861_v33 = vadd.f32 %v860_v4, %v2202_v6  ;;  %v862_v34 = vpop.f32.mrb[95].mxu0 }
 0x1a2   : > { %v863_v35 = vadd.f32 %v862_v34, %v2204_v7  ;;  %1422 = vmatprep.mubr.f32.mxu1 %v1054_v31 }
 0x1a3   : > { %1423 = vmatmul.mubr.f32.gmra.mrb[78].mxu1 %v1053_v32  ;;  %v1055_v37 = vmax.f32 %v861_v33, 0.0 }
 0x1a4   : > { %v1056_v36 = vmax.f32 %v863_v35, 0.0  ;;  %v866_v2 = vpop.f32.mrb[96].mxu0 }
 0x1a5   : > { %v867_v3 = vadd.f32 %v866_v2, %v2202_v6  ;;  %v868_v38 = vpop.f32.mrb[97].mxu0 }
 0x1a6   : > { %v869_v39 = vadd.f32 %v868_v38, %v2204_v7  ;;  %1427 = vmatprep.mubr.f32.mxu1 %v1056_v36 }
 0x1a7   : > { %1428 = vmatmul.mubr.f32.gmra.mrb[80].mxu1 %v1055_v37  ;;  %v1057_v42 = vmax.f32 %v867_v3, 0.0 }
 0x1a8   : > { %v1058_v40 = vmax.f32 %v869_v39, 0.0  ;;  %v872_v41 = vpop.f32.mrb[98].mxu0 }
 0x1a9   : > { %v873_v43 = vadd.f32 %v872_v41, %v2202_v6  ;;  %v874_v44 = vpop.f32.mrb[99].mxu0 }
 0x1aa   : > { %v875_v45 = vadd.f32 %v874_v44, %v2204_v7  ;;  %1432 = vmatprep.mubr.f32.mxu1 %v1058_v40 }
 0x1ab   : > { %1433 = vmatmul.mubr.f32.gmra.mrb[82].mxu1 %v1057_v42  ;;  %v1059_v48 = vmax.f32 %v873_v43, 0.0 }
 0x1ac   : > { %v1060_v47 = vmax.f32 %v875_v45, 0.0  ;;  %v878_v46 = vpop.f32.mrb[100].mxu0 }
 0x1ad   : > { %v879_v50 = vadd.f32 %v878_v46, %v2202_v6  ;;  %v880_v51 = vpop.f32.mrb[101].mxu0 }
 0x1ae   : > { %v881_v54 = vadd.f32 %v880_v51, %v2204_v7  ;;  %1437 = vmatprep.mubr.f32.mxu1 %v1060_v47 }
 0x1af   : > { %1438 = vmatmul.mubr.f32.gmra.mrb[84].mxu1 %v1059_v48  ;;  %v1061_v59 = vmax.f32 %v879_v50, 0.0 }
 0x1b0   : > { %v1062_v55 = vmax.f32 %v881_v54, 0.0  ;;  %v884_v58 = vpop.f32.mrb[102].mxu0 }
 0x1b1   : > { %v885_v62 = vadd.f32 %v884_v58, %v2202_v6  ;;  %v886_v63 = vpop.f32.mrb[103].mxu0 }
 0x1b2   : > { %v887_v49 = vadd.f32 %v886_v63, %v2204_v7  ;;  %1442 = vmatprep.mubr.f32.mxu1 %v1062_v55  ;;  %v2354_v55 = vld [vmem:[%s2568_s4] ss:$0 sm:$0xff] }
 0x1b3   : > { %1443 = vmatmul.mubr.f32.gmra.mrb[86].mxu1 %v1061_v59  ;;  %v1063_v1 = vmax.f32 %v885_v62, 0.0 }
 0x1b4   : > { %v1064_v0 = vmax.f32 %v887_v49, 0.0  ;;  %v890_v53 = vpop.f32.mrb[104].mxu0 }
 0x1b5   : > { %v891_v5 = vadd.f32 %v890_v53, %v2202_v6  ;;  %v892_v8 = vpop.f32.mrb[105].mxu0 }
 0x1b6   : > { %v893_v9 = vadd.f32 %v892_v8, %v2204_v7  ;;  %1447 = vmatprep.mubr.f32.mxu1 %v1064_v0 }
 0x1b7   : > { %1448 = vmatmul.mubr.f32.gmra.mrb[88].mxu1 %v1063_v1  ;;  %v1065_v12 = vmax.f32 %v891_v5, 0.0 }
 0x1b8   : > { %v1066_v10 = vmax.f32 %v893_v9, 0.0  ;;  %v896_v11 = vpop.f32.mrb[106].mxu0 }
 0x1b9   : > { %v897_v52 = vadd.f32 %v896_v11, %v2202_v6  ;;  %v898_v13 = vpop.f32.mrb[107].mxu0 }
 0x1ba   : > { %v899_v57 = vadd.f32 %v898_v13, %v2204_v7  ;;  %1452 = vmatprep.mubr.f32.mxu1 %v1066_v10 }
 0x1bb   : > { %1453 = vmatmul.mubr.f32.gmra.mrb[90].mxu1 %v1065_v12  ;;  %v1067_v16 = vmax.f32 %v897_v52, 0.0 }
 0x1bc   : > { %v1068_v14 = vmax.f32 %v899_v57, 0.0  ;;  %v902_v15 = vpop.f32.mrb[108].mxu0 }
 0x1bd   : > { %v903_v17 = vadd.f32 %v902_v15, %v2202_v6  ;;  %v904_v18 = vpop.f32.mrb[109].mxu0 }
 0x1be   : > { %v905_v19 = vadd.f32 %v904_v18, %v2204_v7  ;;  %1457 = vmatprep.mubr.f32.mxu1 %v1068_v14 }
 0x1bf   : > { %1458 = vmatmul.mubr.f32.gmra.mrb[92].mxu1 %v1067_v16  ;;  %v1069_v20 = vmax.f32 %v903_v17, 0.0 }
 0x1c0   : > { %v1070_v21 = vmax.f32 %v905_v19, 0.0  ;;  %v908_v56 = vpop.f32.mrb[110].mxu0 }
 0x1c1   : > { %v909_v61 = vadd.f32 %v908_v56, %v2202_v6  ;;  %v910_v22 = vpop.f32.mrb[111].mxu0 }
 0x1c2   : > { %v911_v23 = vadd.f32 %v910_v22, %v2204_v7  ;;  %1462 = vmatprep.mubr.f32.mxu1 %v1070_v21 }
 0x1c3   : > { %1463 = vmatmul.mubr.f32.gmra.mrb[94].mxu1 %v1069_v20  ;;  %v1071_v26 = vmax.f32 %v909_v61, 0.0 }
 0x1c4   : > { %v1072_v24 = vmax.f32 %v911_v23, 0.0  ;;  %v914_v25 = vpop.f32.mrb[112].mxu0 }
 0x1c5   : > { %v915_v27 = vadd.f32 %v914_v25, %v2202_v6  ;;  %v916_v28 = vpop.f32.mrb[113].mxu0 }
 0x1c6   : > { %v917_v60 = vadd.f32 %v916_v28, %v2204_v7  ;;  %1467 = vmatprep.mubr.f32.mxu1 %v1072_v24 }
 0x1c7   : > { %1468 = vmatmul.mubr.f32.gmra.mrb[96].mxu1 %v1071_v26  ;;  %v1073_v31 = vmax.f32 %v915_v27, 0.0 }
 0x1c8   : > { %v1074_v29 = vmax.f32 %v917_v60, 0.0  ;;  %v920_v30 = vpop.f32.mrb[114].mxu0 }
 0x1c9   : > { %v921_v4 = vadd.f32 %v920_v30, %v2202_v6  ;;  %v922_v32 = vpop.f32.mrb[115].mxu0 }
 0x1ca   : > { %v923_v33 = vadd.f32 %v922_v32, %v2204_v7  ;;  %1472 = vmatprep.mubr.f32.mxu1 %v1074_v29 }
 0x1cb   : > { %1473 = vmatmul.mubr.f32.gmra.mrb[98].mxu1 %v1073_v31  ;;  %v1075_v36 = vmax.f32 %v921_v4, 0.0 }
 0x1cc   : > { %v1076_v34 = vmax.f32 %v923_v33, 0.0  ;;  %v926_v35 = vpop.f32.mrb[116].mxu0 }
 0x1cd   : > { %v927_v2 = vadd.f32 %v926_v35, %v2202_v6  ;;  %v928_v37 = vpop.f32.mrb[117].mxu0 }
 0x1ce   : > { %v929_v3 = vadd.f32 %v928_v37, %v2204_v7  ;;  %1477 = vmatprep.mubr.f32.mxu1 %v1076_v34 }
 0x1cf   : > { %1478 = vmatmul.mubr.f32.gmra.mrb[100].mxu1 %v1075_v36  ;;  %v1077_v40 = vmax.f32 %v927_v2, 0.0 }
 0x1d0   : > { %v1078_v38 = vmax.f32 %v929_v3, 0.0  ;;  %v932_v39 = vpop.f32.mrb[118].mxu0 }
 0x1d1   : > { %v933_v41 = vadd.f32 %v932_v39, %v2202_v6  ;;  %v934_v42 = vpop.f32.mrb[119].mxu0 }
 0x1d2   : > { %v935_v43 = vadd.f32 %v934_v42, %v2204_v7  ;;  %1482 = vmatprep.mubr.f32.mxu1 %v1078_v38 }
 0x1d3   : > { %1483 = vmatmul.mubr.f32.gmra.mrb[102].mxu1 %v1077_v40  ;;  %v1079_v47 = vmax.f32 %v933_v41, 0.0 }
 0x1d4   : > { %v1080_v44 = vmax.f32 %v935_v43, 0.0  ;;  %v938_v45 = vpop.f32.mrb[120].mxu0 }
 0x1d5   : > { %v939_v46 = vadd.f32 %v938_v45, %v2202_v6  ;;  %v940_v48 = vpop.f32.mrb[121].mxu0 }
 0x1d6   : > { %v941_v50 = vadd.f32 %v940_v48, %v2204_v7  ;;  %1487 = vmatprep.mubr.f32.mxu1 %v1080_v44 }
 0x1d7   : > { %1488 = vmatmul.mubr.f32.gmra.mrb[104].mxu1 %v1079_v47  ;;  %v1081_v58 = vmax.f32 %v939_v46, 0.0 }
 0x1d8   : > { %v1082_v51 = vmax.f32 %v941_v50, 0.0  ;;  %v944_v54 = vpop.f32.mrb[122].mxu0 }
 0x1d9   : > { %v945_v59 = vadd.f32 %v944_v54, %v2202_v6  ;;  %v946_v62 = vpop.f32.mrb[123].mxu0 }
 0x1da   : > { %v947_v63 = vadd.f32 %v946_v62, %v2204_v7  ;;  %v1229_v49 = vpop.f32.mrb[0].mxu1  ;;  %1492 = vmatprep.mubr.f32.mxu1 %v1082_v51 }
 0x1db   : > { %v1230_v0 = vadd.f32 %v2354_v55, %v1229_v49  ;;  %v1231_v53 = vpop.f32.mrb[1].mxu1  ;;  %1493 = vmatmul.mubr.f32.gmra.mrb[106].mxu1 %v1081_v58  ;;  %v1083_v8 = vmax.f32 %v945_v59, 0.0 }
 0x1dc   : > { %v1084_v1 = vmax.f32 %v947_v63, 0.0  ;;  %v950_v5 = vpop.f32.mrb[124].mxu0 }
 0x1dd   : > { %1520 = vst.msk [vmem:[%s2363_s8 + $0x38] sm:$0xff] %vm314_vm1, %v1230_v0  ;;  %v951_v9 = vadd.f32 %v950_v5, %v2202_v6  ;;  %v952_v10 = vpop.f32.mrb[125].mxu0 }
 0x1de   : > { %v953_v11 = vadd.f32 %v952_v10, %v2204_v7  ;;  %v1234_v12 = vpop.f32.mrb[2].mxu1  ;;  %1497 = vmatprep.mubr.f32.mxu1 %v1084_v1 }
 0x1df   : > { %v1235_v52 = vadd.f32 %v2354_v55, %v1234_v12  ;;  %v1236_v13 = vpop.f32.mrb[3].mxu1  ;;  %1498 = vmatmul.mubr.f32.gmra.mrb[108].mxu1 %v1083_v8  ;;  %v1085_v15 = vmax.f32 %v951_v9, 0.0 }
 0x1e0   : > { %v1086_v57 = vmax.f32 %v953_v11, 0.0  ;;  %v956_v14 = vpop.f32.mrb[126].mxu0 }
 0x1e1   : > { %1521 = vst.msk [vmem:[%s2363_s8 + $0x40] sm:$0xff] %vm314_vm1, %v1235_v52  ;;  %v957_v16 = vadd.f32 %v956_v14, %v2202_v6  ;;  %v958_v17 = vpop.f32.mrb[127].mxu0 }
 0x1e2   : > { %v959_v18 = vadd.f32 %v958_v17, %v2204_v7  ;;  %v1239_v19 = vpop.f32.mrb[4].mxu1  ;;  %1502 = vmatprep.mubr.f32.mxu1 %v1086_v57 }
 0x1e3   : > { %v1240_v21 = vadd.f32 %v2354_v55, %v1239_v19  ;;  %v1241_v56 = vpop.f32.mrb[5].mxu1  ;;  %1503 = vmatmul.mubr.f32.gmra.mrb[110].mxu1 %v1085_v15  ;;  %v1087_v22 = vmax.f32 %v957_v16, 0.0 }
 0x1e4   : > { %v1088_v20 = vmax.f32 %v959_v18, 0.0  ;;  %v1194_v61 = vpop.f32.mrb[128].mxu0 }
 0x1e5   : > { %1522 = vst.msk [vmem:[%s2363_s8 + $0x48] sm:$0xff] %vm314_vm1, %v1240_v21  ;;  %v1195_v23 = vadd.f32 %v2354_v55, %v1194_v61  ;;  %v1196_v6 = vpop.f32.mrb[129].mxu0 }
 0x1e6   : > { %v1244_v24 = vpop.f32.mrb[6].mxu1  ;;  %1507 = vmatprep.mubr.f32.mxu1 %v1088_v20 }
 0x1e7   : > { %1513 = vst.msk [vmem:[%s2363_s8] sm:$0xff] %vm314_vm1, %v1195_v23  ;;  %v1245_v7 = vadd.f32 %v2354_v55, %v1244_v24  ;;  %v1246_v25 = vpop.f32.mrb[7].mxu1  ;;  %1508 = vmatmul.mubr.f32.gmra.mrb[112].mxu1 %v1087_v22 }
 0x1e8   : > { %v1199_v26 = vpop.f32.mrb[130].mxu0 }
 0x1e9   : > { %1523 = vst.msk [vmem:[%s2363_s8 + $0x50] sm:$0xff] %vm314_vm1, %v1245_v7  ;;  %v1200_v27 = vadd.f32 %v2354_v55, %v1199_v26  ;;  %v1201_v28 = vpop.f32.mrb[131].mxu0 }
 0x1ea   : > { %v1249_v60 = vpop.f32.mrb[8].mxu1 }
 0x1eb   : > { %1514 = vst.msk [vmem:[%s2363_s8 + $0x8] sm:$0xff] %vm314_vm1, %v1200_v27  ;;  %v1250_v29 = vadd.f32 %v2354_v55, %v1249_v60  ;;  %v1251_v30 = vpop.f32.mrb[9].mxu1 }
 0x1ec   : > { %v1204_v31 = vpop.f32.mrb[132].mxu0 }
 0x1ed   : > { %1524 = vst.msk [vmem:[%s2363_s8 + $0x58] sm:$0xff] %vm314_vm1, %v1250_v29  ;;  %v1205_v4 = vadd.f32 %v2354_v55, %v1204_v31  ;;  %v1206_v32 = vpop.f32.mrb[133].mxu0 }
 0x1ee   : > { %v1254_v33 = vpop.f32.mrb[10].mxu1 }
 0x1ef   : > { %1515 = vst.msk [vmem:[%s2363_s8 + $0x10] sm:$0xff] %vm314_vm1, %v1205_v4  ;;  %v1255_v34 = vadd.f32 %v2354_v55, %v1254_v33  ;;  %v1256_v35 = vpop.f32.mrb[11].mxu1 }
 0x1f0   : > { %v1209_v36 = vpop.f32.mrb[134].mxu0 }
 0x1f1   : > { %1525 = vst.msk [vmem:[%s2363_s8 + $0x60] sm:$0xff] %vm314_vm1, %v1255_v34  ;;  %v1210_v2 = vadd.f32 %v2354_v55, %v1209_v36  ;;  %v1211_v37 = vpop.f32.mrb[135].mxu0 }
 0x1f2   : > { %v1259_v3 = vpop.f32.mrb[12].mxu1 }
 0x1f3   : > { %1516 = vst.msk [vmem:[%s2363_s8 + $0x18] sm:$0xff] %vm314_vm1, %v1210_v2  ;;  %v1260_v38 = vadd.f32 %v2354_v55, %v1259_v3  ;;  %v1261_v39 = vpop.f32.mrb[13].mxu1 }
 0x1f4   : > { %v1214_v40 = vpop.f32.mrb[136].mxu0 }
 0x1f5   : > { %1526 = vst.msk [vmem:[%s2363_s8 + $0x68] sm:$0xff] %vm314_vm1, %v1260_v38  ;;  %v1215_v41 = vadd.f32 %v2354_v55, %v1214_v40  ;;  %v1216_v42 = vpop.f32.mrb[137].mxu0 }
 0x1f6   : > { %v1264_v43 = vpop.f32.mrb[14].mxu1 }
 0x1f7   : > { %1517 = vst.msk [vmem:[%s2363_s8 + $0x20] sm:$0xff] %vm314_vm1, %v1215_v41  ;;  %v1265_v44 = vadd.f32 %v2354_v55, %v1264_v43  ;;  %v1266_v45 = vpop.f32.mrb[15].mxu1 }
 0x1f8   : > { %v1219_v47 = vpop.f32.mrb[138].mxu0 }
 0x1f9   : > { %1527 = vst.msk [vmem:[%s2363_s8 + $0x70] sm:$0xff] %vm314_vm1, %v1265_v44  ;;  %v1220_v46 = vadd.f32 %v2354_v55, %v1219_v47  ;;  %v1221_v48 = vpop.f32.mrb[139].mxu0 }
 0x1fa   : > { %v1269_v50 = vpop.f32.mrb[16].mxu1 }
 0x1fb   : > { %1518 = vst.msk [vmem:[%s2363_s8 + $0x28] sm:$0xff] %vm314_vm1, %v1220_v46  ;;  %v1270_v51 = vadd.f32 %v2354_v55, %v1269_v50  ;;  %v1271_v54 = vpop.f32.mrb[17].mxu1 }
 0x1fc   : > { %v1224_v58 = vpop.f32.mrb[140].mxu0 }
 0x1fd   : > { %1528 = vst.msk [vmem:[%s2363_s8 + $0x78] sm:$0xff] %vm314_vm1, %v1270_v51  ;;  %v1225_v59 = vadd.f32 %v2354_v55, %v1224_v58  ;;  %v1226_v62 = vpop.f32.mrb[141].mxu0 }
 0x1fe   : > { %v1274_v63 = vpop.f32.mrb[18].mxu1 }
 0x1ff   : > { %1519 = vst.msk [vmem:[%s2363_s8 + $0x30] sm:$0xff] %vm314_vm1, %v1225_v59  ;;  %v1275_v49 = vadd.f32 %v2354_v55, %v1274_v63  ;;  %v1276_v0 = vpop.f32.mrb[19].mxu1 }
 0x201   : > { %1529 = vst.msk [vmem:[%s2363_s8 + $0x80] sm:$0xff] %vm314_vm1, %v1275_v49 }
 0x202   : > { %v1279_v53 = vpop.f32.mrb[20].mxu1 }
 0x203   : > { %v1280_v1 = vadd.f32 %v2354_v55, %v1279_v53  ;;  %v1281_v5 = vpop.f32.mrb[21].mxu1 }
 0x205   : > { %1530 = vst.msk [vmem:[%s2363_s8 + $0x88] sm:$0xff] %vm314_vm1, %v1280_v1 }
 0x206   : > { %v1284_v8 = vpop.f32.mrb[22].mxu1 }
 0x207   : > { %v1285_v9 = vadd.f32 %v2354_v55, %v1284_v8  ;;  %v1286_v10 = vpop.f32.mrb[23].mxu1 }
 0x209   : > { %1531 = vst.msk [vmem:[%s2363_s8 + $0x90] sm:$0xff] %vm314_vm1, %v1285_v9 }
 0x20a   : > { %v1289_v11 = vpop.f32.mrb[24].mxu1 }
 0x20b   : > { %v1290_v12 = vadd.f32 %v2354_v55, %v1289_v11  ;;  %v1291_v52 = vpop.f32.mrb[25].mxu1 }
 0x20d   : > { %1532 = vst.msk [vmem:[%s2363_s8 + $0x98] sm:$0xff] %vm314_vm1, %v1290_v12 }
 0x20e   : > { %v1294_v13 = vpop.f32.mrb[26].mxu1 }
 0x20f   : > { %v1295_v57 = vadd.f32 %v2354_v55, %v1294_v13  ;;  %v1296_v14 = vpop.f32.mrb[27].mxu1 }
 0x211   : > { %1533 = vst.msk [vmem:[%s2363_s8 + $0xa0] sm:$0xff] %vm314_vm1, %v1295_v57 }
 0x212   : > { %v1299_v15 = vpop.f32.mrb[28].mxu1 }
 0x213   : > { %v1300_v16 = vadd.f32 %v2354_v55, %v1299_v15  ;;  %v1301_v17 = vpop.f32.mrb[29].mxu1 }
 0x215   : > { %1534 = vst.msk [vmem:[%s2363_s8 + $0xa8] sm:$0xff] %vm314_vm1, %v1300_v16 }
 0x216   : > { %v1304_v18 = vpop.f32.mrb[30].mxu1 }
 0x217   : > { %v1305_v19 = vadd.f32 %v2354_v55, %v1304_v18  ;;  %v1306_v21 = vpop.f32.mrb[31].mxu1 }
 0x219   : > { %1535 = vst.msk [vmem:[%s2363_s8 + $0xb0] sm:$0xff] %vm314_vm1, %v1305_v19 }
 0x21a   : > { %v1309_v56 = vpop.f32.mrb[32].mxu1 }
 0x21b   : > { %v1310_v20 = vadd.f32 %v2354_v55, %v1309_v56  ;;  %v1311_v61 = vpop.f32.mrb[33].mxu1 }
 0x21d   : > { %1536 = vst.msk [vmem:[%s2363_s8 + $0xb8] sm:$0xff] %vm314_vm1, %v1310_v20 }
 0x21e   : > { %v1314_v22 = vpop.f32.mrb[34].mxu1 }
 0x21f   : > { %v1315_v23 = vadd.f32 %v2354_v55, %v1314_v22  ;;  %v1316_v6 = vpop.f32.mrb[35].mxu1 }
 0x221   : > { %1537 = vst.msk [vmem:[%s2363_s8 + $0xc0] sm:$0xff] %vm314_vm1, %v1315_v23 }
 0x222   : > { %v1319_v24 = vpop.f32.mrb[36].mxu1 }
 0x223   : > { %v1320_v7 = vadd.f32 %v2354_v55, %v1319_v24  ;;  %v1321_v25 = vpop.f32.mrb[37].mxu1 }
 0x225   : > { %1538 = vst.msk [vmem:[%s2363_s8 + $0xc8] sm:$0xff] %vm314_vm1, %v1320_v7 }
 0x226   : > { %v1324_v26 = vpop.f32.mrb[38].mxu1 }
 0x227   : > { %v1325_v27 = vadd.f32 %v2354_v55, %v1324_v26  ;;  %v1326_v28 = vpop.f32.mrb[39].mxu1 }
 0x229   : > { %1539 = vst.msk [vmem:[%s2363_s8 + $0xd0] sm:$0xff] %vm314_vm1, %v1325_v27 }
 0x22a   : > { %v1329_v60 = vpop.f32.mrb[40].mxu1 }
 0x22b   : > { %v1330_v29 = vadd.f32 %v2354_v55, %v1329_v60  ;;  %v1331_v30 = vpop.f32.mrb[41].mxu1 }
 0x22d   : > { %1540 = vst.msk [vmem:[%s2363_s8 + $0xd8] sm:$0xff] %vm314_vm1, %v1330_v29 }
 0x22e   : > { %v1334_v31 = vpop.f32.mrb[42].mxu1 }
 0x22f   : > { %v1335_v4 = vadd.f32 %v2354_v55, %v1334_v31  ;;  %v1336_v32 = vpop.f32.mrb[43].mxu1 }
 0x231   : > { %1541 = vst.msk [vmem:[%s2363_s8 + $0xe0] sm:$0xff] %vm314_vm1, %v1335_v4 }
 0x232   : > { %v1339_v33 = vpop.f32.mrb[44].mxu1 }
 0x233   : > { %v1340_v34 = vadd.f32 %v2354_v55, %v1339_v33  ;;  %v1341_v35 = vpop.f32.mrb[45].mxu1 }
 0x235   : > { %1542 = vst.msk [vmem:[%s2363_s8 + $0xe8] sm:$0xff] %vm314_vm1, %v1340_v34 }
 0x236   : > { %v1344_v36 = vpop.f32.mrb[46].mxu1 }
 0x237   : > { %v1345_v2 = vadd.f32 %v2354_v55, %v1344_v36  ;;  %v1346_v37 = vpop.f32.mrb[47].mxu1 }
 0x239   : > { %1543 = vst.msk [vmem:[%s2363_s8 + $0xf0] sm:$0xff] %vm314_vm1, %v1345_v2 }
 0x23a   : > { %v1349_v3 = vpop.f32.mrb[48].mxu1 }
 0x23b   : > { %v1350_v38 = vadd.f32 %v2354_v55, %v1349_v3  ;;  %v1351_v39 = vpop.f32.mrb[49].mxu1 }
 0x23d   : > { %1544 = vst.msk [vmem:[%s2363_s8 + $0xf8] sm:$0xff] %vm314_vm1, %v1350_v38 }
 0x23e   : > { %v1354_v40 = vpop.f32.mrb[50].mxu1 }
 0x23f   : > { %v1355_v41 = vadd.f32 %v2354_v55, %v1354_v40  ;;  %v1356_v42 = vpop.f32.mrb[51].mxu1 }
 0x241   : > { %1545 = vst.msk [vmem:[%s2363_s8 + $0x100] sm:$0xff] %vm314_vm1, %v1355_v41 }
 0x242   : > { %v1359_v43 = vpop.f32.mrb[52].mxu1 }
 0x243   : > { %v1360_v44 = vadd.f32 %v2354_v55, %v1359_v43  ;;  %v1361_v45 = vpop.f32.mrb[53].mxu1 }
 0x245   : > { %1546 = vst.msk [vmem:[%s2363_s8 + $0x108] sm:$0xff] %vm314_vm1, %v1360_v44 }
 0x246   : > { %v1364_v47 = vpop.f32.mrb[54].mxu1 }
 0x247   : > { %v1365_v46 = vadd.f32 %v2354_v55, %v1364_v47  ;;  %v1366_v48 = vpop.f32.mrb[55].mxu1 }
 0x249   : > { %1547 = vst.msk [vmem:[%s2363_s8 + $0x110] sm:$0xff] %vm314_vm1, %v1365_v46 }
 0x24a   : > { %v1369_v50 = vpop.f32.mrb[56].mxu1 }
 0x24b   : > { %v1370_v51 = vadd.f32 %v2354_v55, %v1369_v50  ;;  %v1371_v54 = vpop.f32.mrb[57].mxu1 }
 0x24d   : > { %1548 = vst.msk [vmem:[%s2363_s8 + $0x118] sm:$0xff] %vm314_vm1, %v1370_v51 }
 0x24e   : > { %v1374_v58 = vpop.f32.mrb[58].mxu1 }
 0x24f   : > { %v1375_v59 = vadd.f32 %v2354_v55, %v1374_v58  ;;  %v1376_v62 = vpop.f32.mrb[59].mxu1 }
 0x251   : > { %1549 = vst.msk [vmem:[%s2363_s8 + $0x120] sm:$0xff] %vm314_vm1, %v1375_v59 }
 0x252   : > { %v1379_v63 = vpop.f32.mrb[60].mxu1 }
 0x253   : > { %v1380_v49 = vadd.f32 %v2354_v55, %v1379_v63  ;;  %v1381_v0 = vpop.f32.mrb[61].mxu1 }
 0x255   : > { %1550 = vst.msk [vmem:[%s2363_s8 + $0x128] sm:$0xff] %vm314_vm1, %v1380_v49 }
 0x256   : > { %v1384_v53 = vpop.f32.mrb[62].mxu1 }
 0x257   : > { %v1385_v1 = vadd.f32 %v2354_v55, %v1384_v53  ;;  %v1386_v5 = vpop.f32.mrb[63].mxu1 }
 0x259   : > { %1551 = vst.msk [vmem:[%s2363_s8 + $0x130] sm:$0xff] %vm314_vm1, %v1385_v1 }
 0x25a   : > { %v1389_v8 = vpop.f32.mrb[64].mxu1 }
 0x25b   : > { %v1390_v9 = vadd.f32 %v2354_v55, %v1389_v8  ;;  %v1391_v10 = vpop.f32.mrb[65].mxu1 }
 0x25d   : > { %1552 = vst.msk [vmem:[%s2363_s8 + $0x138] sm:$0xff] %vm314_vm1, %v1390_v9 }
 0x25e   : > { %v1394_v11 = vpop.f32.mrb[66].mxu1 }
 0x25f   : > { %v1395_v12 = vadd.f32 %v2354_v55, %v1394_v11  ;;  %v1396_v52 = vpop.f32.mrb[67].mxu1 }
 0x261   : > { %1553 = vst.msk [vmem:[%s2363_s8 + $0x140] sm:$0xff] %vm314_vm1, %v1395_v12 }
 0x262   : > { %v1399_v13 = vpop.f32.mrb[68].mxu1 }
 0x263   : > { %v1400_v57 = vadd.f32 %v2354_v55, %v1399_v13  ;;  %v1401_v14 = vpop.f32.mrb[69].mxu1 }
 0x265   : > { %1554 = vst.msk [vmem:[%s2363_s8 + $0x148] sm:$0xff] %vm314_vm1, %v1400_v57 }
 0x266   : > { %v1404_v15 = vpop.f32.mrb[70].mxu1 }
 0x267   : > { %v1405_v16 = vadd.f32 %v2354_v55, %v1404_v15  ;;  %v1406_v17 = vpop.f32.mrb[71].mxu1 }
 0x269   : > { %1555 = vst.msk [vmem:[%s2363_s8 + $0x150] sm:$0xff] %vm314_vm1, %v1405_v16 }
 0x26a   : > { %v1409_v18 = vpop.f32.mrb[72].mxu1 }
 0x26b   : > { %v1410_v19 = vadd.f32 %v2354_v55, %v1409_v18  ;;  %v1411_v21 = vpop.f32.mrb[73].mxu1 }
 0x26d   : > { %1556 = vst.msk [vmem:[%s2363_s8 + $0x158] sm:$0xff] %vm314_vm1, %v1410_v19 }
 0x26e   : > { %v1414_v56 = vpop.f32.mrb[74].mxu1 }
 0x26f   : > { %v1415_v20 = vadd.f32 %v2354_v55, %v1414_v56  ;;  %v1416_v61 = vpop.f32.mrb[75].mxu1 }
 0x271   : > { %1557 = vst.msk [vmem:[%s2363_s8 + $0x160] sm:$0xff] %vm314_vm1, %v1415_v20 }
 0x272   : > { %v1419_v22 = vpop.f32.mrb[76].mxu1 }
 0x273   : > { %v1420_v23 = vadd.f32 %v2354_v55, %v1419_v22  ;;  %v1421_v6 = vpop.f32.mrb[77].mxu1 }
 0x275   : > { %1558 = vst.msk [vmem:[%s2363_s8 + $0x168] sm:$0xff] %vm314_vm1, %v1420_v23 }
 0x276   : > { %v1424_v24 = vpop.f32.mrb[78].mxu1 }
 0x277   : > { %v1425_v7 = vadd.f32 %v2354_v55, %v1424_v24  ;;  %v1426_v25 = vpop.f32.mrb[79].mxu1 }
 0x279   : > { %1559 = vst.msk [vmem:[%s2363_s8 + $0x170] sm:$0xff] %vm314_vm1, %v1425_v7 }
 0x27a   : > { %v1429_v26 = vpop.f32.mrb[80].mxu1 }
 0x27b   : > { %v1430_v27 = vadd.f32 %v2354_v55, %v1429_v26  ;;  %v1431_v28 = vpop.f32.mrb[81].mxu1 }
 0x27d   : > { %1560 = vst.msk [vmem:[%s2363_s8 + $0x178] sm:$0xff] %vm314_vm1, %v1430_v27 }
 0x27e   : > { %v1434_v60 = vpop.f32.mrb[82].mxu1 }
 0x27f   : > { %v1435_v29 = vadd.f32 %v2354_v55, %v1434_v60  ;;  %v1436_v30 = vpop.f32.mrb[83].mxu1 }
 0x281   : > { %1561 = vst.msk [vmem:[%s2363_s8 + $0x180] sm:$0xff] %vm314_vm1, %v1435_v29 }
 0x282   : > { %v1439_v31 = vpop.f32.mrb[84].mxu1 }
 0x283   : > { %v1440_v4 = vadd.f32 %v2354_v55, %v1439_v31  ;;  %v1441_v32 = vpop.f32.mrb[85].mxu1 }
 0x285   : > { %1562 = vst.msk [vmem:[%s2363_s8 + $0x188] sm:$0xff] %vm314_vm1, %v1440_v4 }
 0x286   : > { %v1444_v33 = vpop.f32.mrb[86].mxu1 }
 0x287   : > { %v1445_v34 = vadd.f32 %v2354_v55, %v1444_v33  ;;  %v1446_v35 = vpop.f32.mrb[87].mxu1 }
 0x289   : > { %1563 = vst.msk [vmem:[%s2363_s8 + $0x190] sm:$0xff] %vm314_vm1, %v1445_v34 }
 0x28a   : > { %v1449_v36 = vpop.f32.mrb[88].mxu1 }
 0x28b   : > { %v1450_v2 = vadd.f32 %v2354_v55, %v1449_v36  ;;  %v1451_v37 = vpop.f32.mrb[89].mxu1 }
 0x28d   : > { %1564 = vst.msk [vmem:[%s2363_s8 + $0x198] sm:$0xff] %vm314_vm1, %v1450_v2 }
 0x28e   : > { %v1454_v3 = vpop.f32.mrb[90].mxu1 }
 0x28f   : > { %v1455_v38 = vadd.f32 %v2354_v55, %v1454_v3  ;;  %v1456_v39 = vpop.f32.mrb[91].mxu1 }
 0x291   : > { %1565 = vst.msk [vmem:[%s2363_s8 + $0x1a0] sm:$0xff] %vm314_vm1, %v1455_v38 }
 0x292   : > { %v1459_v40 = vpop.f32.mrb[92].mxu1 }
 0x293   : > { %v1460_v41 = vadd.f32 %v2354_v55, %v1459_v40  ;;  %v1461_v42 = vpop.f32.mrb[93].mxu1 }
 0x295   : > { %1566 = vst.msk [vmem:[%s2363_s8 + $0x1a8] sm:$0xff] %vm314_vm1, %v1460_v41 }
 0x296   : > { %v1464_v43 = vpop.f32.mrb[94].mxu1 }
 0x297   : > { %v1465_v44 = vadd.f32 %v2354_v55, %v1464_v43  ;;  %v1466_v45 = vpop.f32.mrb[95].mxu1 }
 0x299   : > { %1567 = vst.msk [vmem:[%s2363_s8 + $0x1b0] sm:$0xff] %vm314_vm1, %v1465_v44 }
 0x29a   : > { %v1469_v47 = vpop.f32.mrb[96].mxu1 }
 0x29b   : > { %v1470_v46 = vadd.f32 %v2354_v55, %v1469_v47  ;;  %v1471_v48 = vpop.f32.mrb[97].mxu1 }
 0x29d   : > { %1568 = vst.msk [vmem:[%s2363_s8 + $0x1b8] sm:$0xff] %vm314_vm1, %v1470_v46 }
 0x29e   : > { %v1474_v50 = vpop.f32.mrb[98].mxu1 }
 0x29f   : > { %v1475_v51 = vadd.f32 %v2354_v55, %v1474_v50  ;;  %v1476_v54 = vpop.f32.mrb[99].mxu1 }
 0x2a1   : > { %1569 = vst.msk [vmem:[%s2363_s8 + $0x1c0] sm:$0xff] %vm314_vm1, %v1475_v51 }
 0x2a2   : > { %v1479_v58 = vpop.f32.mrb[100].mxu1 }
 0x2a3   : > { %v1480_v59 = vadd.f32 %v2354_v55, %v1479_v58  ;;  %v1481_v62 = vpop.f32.mrb[101].mxu1 }
 0x2a5   : > { %1570 = vst.msk [vmem:[%s2363_s8 + $0x1c8] sm:$0xff] %vm314_vm1, %v1480_v59 }
 0x2a6   : > { %v1484_v63 = vpop.f32.mrb[102].mxu1 }
 0x2a7   : > { %v1485_v49 = vadd.f32 %v2354_v55, %v1484_v63  ;;  %v1486_v0 = vpop.f32.mrb[103].mxu1 }
 0x2a9   : > { %1571 = vst.msk [vmem:[%s2363_s8 + $0x1d0] sm:$0xff] %vm314_vm1, %v1485_v49 }
 0x2aa   : > { %v1489_v53 = vpop.f32.mrb[104].mxu1 }
 0x2ab   : > { %v1490_v1 = vadd.f32 %v2354_v55, %v1489_v53  ;;  %v1491_v5 = vpop.f32.mrb[105].mxu1 }
 0x2ad   : > { %1572 = vst.msk [vmem:[%s2363_s8 + $0x1d8] sm:$0xff] %vm314_vm1, %v1490_v1 }
 0x2ae   : > { %v1494_v8 = vpop.f32.mrb[106].mxu1 }
 0x2af   : > { %v1495_v9 = vadd.f32 %v2354_v55, %v1494_v8  ;;  %v1496_v10 = vpop.f32.mrb[107].mxu1 }
 0x2b1   : > { %1573 = vst.msk [vmem:[%s2363_s8 + $0x1e0] sm:$0xff] %vm314_vm1, %v1495_v9 }
 0x2b2   : > { %v1499_v11 = vpop.f32.mrb[108].mxu1 }
 0x2b3   : > { %v1500_v12 = vadd.f32 %v2354_v55, %v1499_v11  ;;  %v1501_v52 = vpop.f32.mrb[109].mxu1 }
 0x2b5   : > { %1574 = vst.msk [vmem:[%s2363_s8 + $0x1e8] sm:$0xff] %vm314_vm1, %v1500_v12 }
 0x2b6   : > { %v1504_v13 = vpop.f32.mrb[110].mxu1 }
 0x2b7   : > { %v1505_v57 = vadd.f32 %v2354_v55, %v1504_v13  ;;  %v1506_v14 = vpop.f32.mrb[111].mxu1 }
 0x2b9   : > { %1575 = vst.msk [vmem:[%s2363_s8 + $0x1f0] sm:$0xff] %vm314_vm1, %v1505_v57 }
 0x2ba   : > { %v1509_v15 = vpop.f32.mrb[112].mxu1 }
 0x2bb   : > { %v1510_v16 = vadd.f32 %v2354_v55, %v1509_v15  ;;  %v1511_v17 = vpop.f32.mrb[113].mxu1 }
 0x2bd   : > { %1576 = vst.msk [vmem:[%s2363_s8 + $0x1f8] sm:$0xff] %vm314_vm1, %v1510_v16 }
 0x2be PF: > { %s15_s18 = sadd.s32 1, %s1808_s18  }
 0x2bf   : > { %p12_p4 = scmp.ge.s32.totalorder %s15_s18, 10  }
 0x2c1   :  { %14 = sbr.rel (!%p12_p4) target bundleno = 1 (0x1), region = 70 }

</bundles_post_ra>
